<compile_context>
chip_gen: v5e
topology: v5e:2x2
jax: 0.10.0
libtpu: 0.0.40
codegen_flags: <defaults>
</compile_context>

<pallas_src>
import functools

import jax
import jax.numpy as jnp
from jax.experimental import pallas as pl
from jax.experimental.pallas import tpu as pltpu

LN_EPS = 1e-5  # nn.LayerNorm default


# ---------------------------------------------------------------------------
# In-kernel math helpers (pure jnp, traced inside the Pallas kernel)
# ---------------------------------------------------------------------------
def _layernorm(x, gamma, beta):
    mu = jnp.mean(x, axis=-1, keepdims=True)
    xc = x - mu
    var = jnp.mean(xc * xc, axis=-1, keepdims=True)
    return xc * jax.lax.rsqrt(var + LN_EPS) * gamma + beta


def _gelu_exact(x, exact):
    # PyTorch nn.GELU() default = exact erf GELU.  erf via Abramowitz & Stegun 7.1.26
    # (|abs err| <= 1.5e-7); Mosaic has no guaranteed lax.erf lowering.
    a1, a2, a3, a4, a5 = 0.254829592, -0.284496736, 1.421413741, -1.453152027, 1.061405429
    p = 0.3275911
    u = x * 0.7071067811865476
    sgn = jnp.where(u >= 0.0, 1.0, -1.0)
    z = jnp.abs(u)
    w = 1.0 + p * z
    # perf (bf16) mode: EUP approx reciprocal next to the existing exp; exact divide for fp32.
    t = (1.0 / w) if exact else pl.reciprocal(w, approx=True)
    poly = ((((a5 * t + a4) * t + a3) * t + a2) * t + a1) * t
    erf = sgn * (1.0 - poly * jnp.exp(-z * z))
    return 0.5 * x * (1.0 + erf)


# ---------------------------------------------------------------------------
# Fused transformer-layer kernel  (one grid step == one batch element)
#   LN -> fused QKV -> per-head softmax(QK^T)V in (q_tile, n) strips -> dense out-proj
#   -> +residual -> LN -> MLP (GELU) -> +residual  [-> final LN on the last layer]
# ---------------------------------------------------------------------------
def _layer_kernel(*refs, heads, dim_head, q_tile, compute_dtype, exact, apply_final_ln):
    if apply_final_ln:
        (x_ref, ag_ref, ab_ref, wqkv_ref, wo_ref, fg_ref, fb_ref,
         w1_ref, b1_ref, w2_ref, b2_ref, lng_ref, lnb_ref, o_ref, acc_ref) = refs
    else:
        (x_ref, ag_ref, ab_ref, wqkv_ref, wo_ref, fg_ref, fb_ref,
         w1_ref, b1_ref, w2_ref, b2_ref, o_ref, acc_ref) = refs
        lng_ref = lnb_ref = None

    f32 = jnp.float32
    x = x_ref[0].astype(f32)                          # (n, d) residual stream, fp32
    n, d = x.shape
    inner = heads * dim_head

    # ---------------- attention sub-block (pre-norm, residual fused) ----------------
    xn = _layernorm(x, ag_ref[...], ab_ref[...]).astype(compute_dtype)
    # One lane-dense projection: N = 3*inner.  Softmax scale is pre-folded into the q
    # columns.  In bf16 mode q/k/v are rounded to bf16 here (deliberate precision trade).
    qkv = jnp.dot(xn, wqkv_ref[...], preferred_element_type=compute_dtype)   # (n, 3*inner)

    num_qt = n // q_tile
    # TODO(synk): switch the head / q-tile loops to lax.fori_loop(unroll=True) for
    #             heads > ~4 or very long sequences to bound live ranges / code size.
    for h in range(heads):
        c0 = h * dim_head
        k_h = qkv[:, inner + c0: inner + c0 + dim_head]            # (n, dh)
        v_h = qkv[:, 2 * inner + c0: 2 * inner + c0 + dim_head]    # (n, dh)
        for t in range(num_qt):
            r0 = t * q_tile
            q_ht = qkv[r0:r0 + q_tile, c0:c0 + dim_head]           # (q_tile, dh)
            # 'qd,kd->qk': contract last dims, no explicit transpose of k
            s = jax.lax.dot_general(q_ht, k_h, (((1,), (1,)), ((), ())),
                                    preferred_element_type=f32)    # (q_tile, n) fp32
            m = jnp.max(s, axis=-1, keepdims=True)
            e = jnp.exp(s - m)
            den = jnp.sum(e, axis=-1, keepdims=True)
            p = (e / den) if exact else e * pl.reciprocal(den, approx=True)
            o_ht = jnp.dot(p.astype(compute_dtype), v_h,
                           preferred_element_type=f32)             # (q_tile, dh) fp32
            # head h owns lanes [h*dh : (h+1)*dh] of the (n, inner) scratch
            acc_ref[r0:r0 + q_tile, c0:c0 + dim_head] = o_ht.astype(acc_ref.dtype)

    # Single dense output projection: (n, inner) @ (inner, d), K = inner.
    x = x + jnp.dot(acc_ref[...], wo_ref[...], preferred_element_type=f32)

    # ---------------- feed-forward sub-block (pre-norm, residual fused) -------------
    xn = _layernorm(x, fg_ref[...], fb_ref[...]).astype(compute_dtype)
    hid = jnp.dot(xn, w1_ref[...], preferred_element_type=f32) + b1_ref[...]
    hid = _gelu_exact(hid, exact).astype(compute_dtype)
    x = x + jnp.dot(hid, w2_ref[...], preferred_element_type=f32) + b2_ref[...]

    # ---------------- final LayerNorm folded into the last layer --------------------
    if apply_final_ln:
        x = _layernorm(x, lng_ref[...], lnb_ref[...])

    o_ref[0] = x.astype(o_ref.dtype)


# ---------------------------------------------------------------------------
# Spec / VMEM helpers
# ---------------------------------------------------------------------------
@functools.lru_cache(maxsize=None)
def _buffered_weights_supported():
    """Probe once whether pipeline_mode=pl.Buffered(1) (single-buffered constant blocks)
    is available in this JAX version; fall back to default double buffering if not."""
    def k(x_ref, w_ref, o_ref):
        o_ref[...] = x_ref[...] + w_ref[...]
    try:
        f = pl.pallas_call(
            k,
            out_shape=jax.ShapeDtypeStruct((8, 128), jnp.float32),
            grid=(1,),
            in_specs=[pl.BlockSpec((8, 128), lambda i: (0, 0)),
                      pl.BlockSpec((8, 128), lambda i: (0, 0),
                                   pipeline_mode=pl.Buffered(1))],
            out_specs=pl.BlockSpec((8, 128), lambda i: (0, 0)),
        )
        z = jnp.zeros((8, 128), jnp.float32)
        jax.block_until_ready(f(z, z))
        return True
    except Exception:
        return False


def _const_spec(shape):
    """BlockSpec for a weight/bias whose block index never changes across the grid."""
    nd = len(shape)
    idx = lambda i: (0,) * nd
    if _buffered_weights_supported():
        return pl.BlockSpec(shape, idx, pipeline_mode=pl.Buffered(1))
    return pl.BlockSpec(shape, idx)


def _pick_q_tile(n):
    for t in (256, 128):
        if n % t == 0:
            return t
    return n


def _vmem_cap_bytes():
    """Generation-aware VMEM budget: physical capacity minus headroom for Mosaic internal
    scratch and the double-buffered activation blocks (v7x 64MiB -> ~52MiB requestable,
    v5e/v6e 128MiB -> ~116MiB)."""
    phys = 128 << 20
    try:
        info = pltpu.get_tpu_info()
        phys = int(getattr(info, "vmem_capacity_bytes", phys) or phys)
    except Exception:
        pass
    return max(phys - (12 << 20), 24 << 20)


def _vmem_limit_bytes(n, d, inner, mlp, q_tile, w_itemsize, weight_buffers):
    weights = (3 * d * inner + inner * d + 2 * d * mlp + 2 * mlp + 3 * d) \
        * w_itemsize * weight_buffers
    # fp32 intermediates (x, xn, residuals, qkv, hid, score strip) + compute_dtype scratch
    acts = 4 * (6 * n * d + 3 * n * inner + n * mlp + 2 * q_tile * n) + n * inner * w_itemsize
    est = weights + 2 * acts + (6 << 20)
    # TODO(synk): if `est` exceeds the generation cap (very long seq / huge mlp), fall back
    #             to a q-tile grid axis + online-softmax (flash) formulation instead of clamping.
    return int(min(max(est, 32 << 20), _vmem_cap_bytes()))


# ---------------------------------------------------------------------------
# pallas_call wrapper: one fused layer (optionally with the final LN folded in)
# ---------------------------------------------------------------------------
def transformer_layer(x, lp, *, final_ln=None):
    b, n, d = x.shape
    heads = lp["heads"]
    inner = lp["wo"].shape[0]
    dim_head = inner // heads
    mlp = lp["w1"].shape[1]
    compute_dtype = lp["wqkv"].dtype
    exact = jnp.dtype(compute_dtype) == jnp.float32
    q_tile = _pick_q_tile(n)
    apply_final = final_ln is not None

    kernel = functools.partial(
        _layer_kernel, heads=heads, dim_head=dim_head, q_tile=q_tile,
        compute_dtype=compute_dtype, exact=exact, apply_final_ln=apply_final)

    in_specs = [
        pl.BlockSpec((1, n, d), lambda i: (i, 0, 0)),   # x (per-batch block, double-buffered)
        _const_spec((1, d)),                            # attn LN gamma
        _const_spec((1, d)),                            # attn LN beta
        _const_spec((d, 3 * inner)),                    # Wqkv (scale folded into q cols)
        _const_spec((inner, d)),                        # Wo
        _const_spec((1, d)),                            # ff LN gamma
        _const_spec((1, d)),                            # ff LN beta
        _const_spec((d, mlp)),                          # W1
        _const_spec((1, mlp)),                          # b1
        _const_spec((mlp, d)),                          # W2
        _const_spec((1, d)),                            # b2
    ]
    args = [x, lp["a_g"], lp["a_b"], lp["wqkv"], lp["wo"],
            lp["f_g"], lp["f_b"], lp["w1"], lp["b1"], lp["w2"], lp["b2"]]
    if apply_final:
        in_specs += [_const_spec((1, d)), _const_spec((1, d))]
        args += [final_ln[0], final_ln[1]]

    vmem_limit = _vmem_limit_bytes(
        n, d, inner, mlp, q_tile, jnp.dtype(compute_dtype).itemsize,
        1 if _buffered_weights_supported() else 2)

    return pl.pallas_call(
        kernel,
        out_shape=jax.ShapeDtypeStruct((b, n, d), x.dtype),
        grid=(b,),
        in_specs=in_specs,
        out_specs=pl.BlockSpec((1, n, d), lambda i: (i, 0, 0)),
        scratch_shapes=[pltpu.VMEM((n, inner), compute_dtype)],   # per-head attn outputs
        compiler_params=pltpu.CompilerParams(
            dimension_semantics=("parallel",),
            vmem_limit_bytes=vmem_limit),
    )(*args)


def transformer_forward(x, prepped):
    layers = prepped["layers"]
    for idx, lp in enumerate(layers):
        fin = (prepped["final_g"], prepped["final_b"]) if idx == len(layers) - 1 else None
        x = transformer_layer(x, lp, final_ln=fin)   # final LN fused into the last layer
    return x


# ---------------------------------------------------------------------------
# Parameters: PyTorch-like layout + kernel-ready preparation
# ---------------------------------------------------------------------------
def init_params(key, dim, depth, heads, dim_head, mlp_dim):
    inner = heads * dim_head
    layers = []
    for _ in range(depth):
        key, k1, k2, k3, k4, k5, k6, k7, k8, k9, k10 = jax.random.split(key, 11)
        layers.append({
            "attn": {
                "ln_g": 1.0 + 0.1 * jax.random.normal(k5, (dim,), jnp.float32),
                "ln_b": 0.05 * jax.random.normal(k6, (dim,), jnp.float32),
                "w_qkv": 0.05 * jax.random.normal(k1, (dim, 3 * inner), jnp.float32),
                "w_out": 0.05 * jax.random.normal(k2, (inner, dim), jnp.float32),
            },
            "ff": {
                "ln_g": 1.0 + 0.1 * jax.random.normal(k7, (dim,), jnp.float32),
                "ln_b": 0.05 * jax.random.normal(k8, (dim,), jnp.float32),
                "w1": 0.05 * jax.random.normal(k3, (dim, mlp_dim), jnp.float32),
                "b1": 0.05 * jax.random.normal(k9, (mlp_dim,), jnp.float32),
                "w2": 0.05 * jax.random.normal(k4, (mlp_dim, dim), jnp.float32),
                "b2": 0.05 * jax.random.normal(k10, (dim,), jnp.float32),
            },
        })
    key, kg, kb = jax.random.split(key, 3)
    return {"layers": layers,
            "final_ln_g": 1.0 + 0.1 * jax.random.normal(kg, (dim,), jnp.float32),
            "final_ln_b": 0.05 * jax.random.normal(kb, (dim,), jnp.float32)}


def prepare_params(params, *, heads, dim_head, compute_dtype):
    """Fold the softmax scale into Wq columns, keep Wqkv fused (d, 3*inner), cast matmul
    weights to the compute dtype.  LN params stay fp32."""
    scale = dim_head ** -0.5
    inner = heads * dim_head
    prepped = {"layers": []}
    for layer in params["layers"]:
        a, f = layer["attn"], layer["ff"]
        wqkv = a["w_qkv"].at[:, :inner].multiply(scale)      # fold scale into q columns
        prepped["layers"].append({
            "heads": heads,
            "a_g": a["ln_g"].reshape(1, -1), "a_b": a["ln_b"].reshape(1, -1),
            "wqkv": wqkv.astype(compute_dtype),
            "wo": a["w_out"].astype(compute_dtype),
            "f_g": f["ln_g"].reshape(1, -1), "f_b": f["ln_b"].reshape(1, -1),
            "w1": f["w1"].astype(compute_dtype), "b1": f["b1"].reshape(1, -1),
            "w2": f["w2"].astype(compute_dtype), "b2": f["b2"].reshape(1, -1),
        })
    prepped["final_g"] = params["final_ln_g"].reshape(1, -1)
    prepped["final_b"] = params["final_ln_b"].reshape(1, -1)
    return prepped


# ---------------------------------------------------------------------------
# Pure-JAX reference (exact PyTorch semantics, fp32)
# ---------------------------------------------------------------------------
def _ref_forward(x, params, *, heads, dim_head):
    def ln(v, g, b):
        mu = jnp.mean(v, axis=-1, keepdims=True)
        var = jnp.mean((v - mu) ** 2, axis=-1, keepdims=True)
        return (v - mu) * jax.lax.rsqrt(var + LN_EPS) * g + b

    inner = heads * dim_head
    scale = dim_head ** -0.5
    for layer in params["layers"]:
        a = layer["attn"]
        xn = ln(x, a["ln_g"], a["ln_b"])
        qkv = xn @ a["w_qkv"]
        q, k, v = jnp.split(qkv, 3, axis=-1)
        split = lambda t: t.reshape(t.shape[0], t.shape[1], heads, dim_head).transpose(0, 2, 1, 3)
        q, k, v = map(split, (q, k, v))
        dots = jnp.einsum("bhqd,bhkd->bhqk", q, k) * scale
        attn = jax.nn.softmax(dots, axis=-1)
        out = jnp.einsum("bhqk,bhkd->bhqd", attn, v)
        out = out.transpose(0, 2, 1, 3).reshape(x.shape[0], x.shape[1], inner)
        x = out @ a["w_out"] + x

        f = layer["ff"]
        xn = ln(x, f["ln_g"], f["ln_b"])
        h = jax.nn.gelu(xn @ f["w1"] + f["b1"], approximate=False)
        x = h @ f["w2"] + f["b2"] + x
    return ln(x, params["final_ln_g"], params["final_ln_b"])


if __name__ == "__main__":
    # Small, lane-friendly config consistent with Transformer(dim, depth, heads, dim_head, mlp_dim)
    dim, depth, heads, dim_head, mlp_dim = 128, 2, 2, 64, 256
    batch, seq = 2, 16

    key = jax.random.PRNGKey(0)
    kx, kp = jax.random.split(key)
    x = jax.random.normal(kx, (batch, seq, dim), jnp.float32)
    params = init_params(kp, dim, depth, heads, dim_head, mlp_dim)
    with jax.default_matmul_precision("float32"):
        ref = jax.block_until_ready(_ref_forward(x, params, heads=heads, dim_head=dim_head))

    # fp32-matmul path (exact softmax/GELU divides -> tight correctness check)
    p32 = prepare_params(params, heads=heads, dim_head=dim_head, compute_dtype=jnp.float32)
    out32 = jax.block_until_ready(transformer_forward(x, p32))
    assert out32.shape == (batch, seq, dim)
    err32 = float(jnp.max(jnp.abs(out32 - ref)))
    assert err32 < 1e-2, f"Pallas fp32 output mismatch vs reference: {err32}"

    # bf16-matmul path (perf mode: bf16 MXU inputs, approx EUP reciprocals, fp32 statistics)
    pbf = prepare_params(params, heads=heads, dim_head=dim_head, compute_dtype=jnp.bfloat16)
    outbf = jax.block_until_ready(transformer_forward(x, pbf))
    assert outbf.shape == (batch, seq, dim)
    errbf = float(jnp.max(jnp.abs(outbf - ref)))
    assert errbf < 1e-1, f"Pallas bf16 output mismatch vs reference: {errbf}"

    print("KERNEL_OK")
</pallas_src>

<mosaic_0001>
module attributes {stable_mosaic.version = 11 : i64} {
  func.func @k(%arg0: i32, %arg1: memref<8x128xf32, #tpu.memory_space<vmem>>, %arg2: memref<8x128xf32, #tpu.memory_space<vmem>>, %arg3: memref<8x128xf32, #tpu.memory_space<vmem>>) attributes {dimension_semantics = [#tpu.dimension_semantics<arbitrary>], iteration_bounds = array<i64: 1>, scalar_prefetch = 0 : i64, scratch_operands = 0 : i64, tpu.core_type = #tpu.core_type<tc>, window_params = [{pipeline_mode = #tpu.pipeline_mode<synchronous>, transform_indices = @transform_0, window_bounds = array<i64: 8, 128>}, {pipeline_mode = #tpu.pipeline_mode<synchronous>, transform_indices = @transform_1, window_bounds = array<i64: 8, 128>}, {pipeline_mode = #tpu.pipeline_mode<synchronous>, transform_indices = @transform_2, window_bounds = array<i64: 8, 128>}]} {
    %c0 = arith.constant 0 : index
    %c0_0 = arith.constant 0 : index
    %0 = vector.load %arg1[%c0, %c0_0] : memref<8x128xf32, #tpu.memory_space<vmem>>, vector<8x128xf32>
    %c0_1 = arith.constant 0 : index
    %c0_2 = arith.constant 0 : index
    %1 = vector.load %arg2[%c0_1, %c0_2] : memref<8x128xf32, #tpu.memory_space<vmem>>, vector<8x128xf32>
    %2 = arith.addf %0, %1 : vector<8x128xf32>
    %c0_3 = arith.constant 0 : index
    %c0_4 = arith.constant 0 : index
    %3 = vector.load %arg3[%c0_3, %c0_4] : memref<8x128xf32, #tpu.memory_space<vmem>>, vector<8x128xf32>
    tpu.vector_store %arg3[%c0_3, %c0_4], %2 {strides = array<i32>} : memref<8x128xf32, #tpu.memory_space<vmem>>, vector<8x128xf32>,
    return
  }
  func.func @transform_0(%arg0: i32) -> (i32, i32) {
    %c0_i32 = arith.constant 0 : i32
    %c0_i32_0 = arith.constant 0 : i32
    %c0_i32_1 = arith.constant 0 : i32
    return %c0_i32, %c0_i32_0 : i32, i32
  }
  func.func @transform_1(%arg0: i32) -> (i32, i32) {
    %c0_i32 = arith.constant 0 : i32
    %c0_i32_0 = arith.constant 0 : i32
    %c0_i32_1 = arith.constant 0 : i32
    return %c0_i32, %c0_i32_0 : i32, i32
  }
  func.func @transform_2(%arg0: i32) -> (i32, i32) {
    %c0_i32 = arith.constant 0 : i32
    %c0_i32_0 = arith.constant 0 : i32
    %c0_i32_1 = arith.constant 0 : i32
    return %c0_i32, %c0_i32_0 : i32, i32
  }
}

module attributes {stable_mosaic.version = 11 : i64} {
  func.func @_layer_kernel(%arg0: i32, %arg1: memref<1x16x128xf32, #tpu.memory_space<vmem>>, %arg2: memref<1x128xf32, #tpu.memory_space<vmem>>, %arg3: memref<1x128xf32, #tpu.memory_space<vmem>>, %arg4: memref<128x384xf32, #tpu.memory_space<vmem>>, %arg5: memref<128x128xf32, #tpu.memory_space<vmem>>, %arg6: memref<1x128xf32, #tpu.memory_space<vmem>>, %arg7: memref<1x128xf32, #tpu.memory_space<vmem>>, %arg8: memref<128x256xf32, #tpu.memory_space<vmem>>, %arg9: memref<1x256xf32, #tpu.memory_space<vmem>>, %arg10: memref<256x128xf32, #tpu.memory_space<vmem>>, %arg11: memref<1x128xf32, #tpu.memory_space<vmem>>, %arg12: memref<1x16x128xf32, #tpu.memory_space<vmem>>, %arg13: memref<16x128xf32, #tpu.memory_space<vmem>>) attributes {dimension_semantics = [#tpu.dimension_semantics<parallel>], iteration_bounds = array<i64: 2>, scalar_prefetch = 0 : i64, scratch_operands = 1 : i64, tpu.core_type = #tpu.core_type<tc>, window_params = [{transform_indices = @transform_0, window_bounds = array<i64: 1, 16, 128>}, {pipeline_mode = #tpu.pipeline_mode<synchronous>, transform_indices = @transform_1, window_bounds = array<i64: 1, 128>}, {pipeline_mode = #tpu.pipeline_mode<synchronous>, transform_indices = @transform_2, window_bounds = array<i64: 1, 128>}, {pipeline_mode = #tpu.pipeline_mode<synchronous>, transform_indices = @transform_3, window_bounds = array<i64: 128, 384>}, {pipeline_mode = #tpu.pipeline_mode<synchronous>, transform_indices = @transform_4, window_bounds = array<i64: 128, 128>}, {pipeline_mode = #tpu.pipeline_mode<synchronous>, transform_indices = @transform_5, window_bounds = array<i64: 1, 128>}, {pipeline_mode = #tpu.pipeline_mode<synchronous>, transform_indices = @transform_6, window_bounds = array<i64: 1, 128>}, {pipeline_mode = #tpu.pipeline_mode<synchronous>, transform_indices = @transform_7, window_bounds = array<i64: 128, 256>}, {pipeline_mode = #tpu.pipeline_mode<synchronous>, transform_indices = @transform_8, window_bounds = array<i64: 1, 256>}, {pipeline_mode = #tpu.pipeline_mode<synchronous>, transform_indices = @transform_9, window_bounds = array<i64: 256, 128>}, {pipeline_mode = #tpu.pipeline_mode<synchronous>, transform_indices = @transform_10, window_bounds = array<i64: 1, 128>}, {transform_indices = @transform_11, window_bounds = array<i64: 1, 16, 128>}]} {
    %c0 = arith.constant 0 : index
    %c0_0 = arith.constant 0 : index
    %c0_1 = arith.constant 0 : index
    %0 = vector.load %arg1[%c0, %c0_0, %c0_1] : memref<1x16x128xf32, #tpu.memory_space<vmem>>, vector<1x16x128xf32>
    %1 = vector.shape_cast %0 : vector<1x16x128xf32> to vector<16x128xf32>
    %c0_2 = arith.constant 0 : index
    %c0_3 = arith.constant 0 : index
    %2 = vector.load %arg2[%c0_2, %c0_3] : memref<1x128xf32, #tpu.memory_space<vmem>>, vector<1x128xf32>
    %c0_4 = arith.constant 0 : index
    %c0_5 = arith.constant 0 : index
    %3 = vector.load %arg3[%c0_4, %c0_5] : memref<1x128xf32, #tpu.memory_space<vmem>>, vector<1x128xf32>
    %cst = arith.constant dense<0.000000e+00> : vector<16xf32>
    %4 = vector.multi_reduction <add>, %1, %cst [1] : vector<16x128xf32> to vector<16xf32>
    %5 = vector.shape_cast %4 : vector<16xf32> to vector<16x1xf32>
    %cst_6 = arith.constant 1.280000e+02 : f32
    %6 = vector.broadcast %cst_6 : f32 to vector<16x1xf32>
    %7 = arith.divf %5, %6 : vector<16x1xf32>
    %8 = vector.broadcast %7 : vector<16x1xf32> to vector<16x128xf32>
    %9 = arith.subf %1, %8 : vector<16x128xf32>
    %10 = arith.mulf %9, %9 : vector<16x128xf32>
    %cst_7 = arith.constant dense<0.000000e+00> : vector<16xf32>
    %11 = vector.multi_reduction <add>, %10, %cst_7 [1] : vector<16x128xf32> to vector<16xf32>
    %12 = vector.shape_cast %11 : vector<16xf32> to vector<16x1xf32>
    %cst_8 = arith.constant 1.280000e+02 : f32
    %13 = vector.broadcast %cst_8 : f32 to vector<16x1xf32>
    %14 = arith.divf %12, %13 : vector<16x1xf32>
    %cst_9 = arith.constant 9.99999974E-6 : f32
    %15 = vector.broadcast %cst_9 : f32 to vector<16x1xf32>
    %16 = arith.addf %14, %15 : vector<16x1xf32>
    %17 = math.rsqrt %16 : vector<16x1xf32>
    %18 = vector.broadcast %17 : vector<16x1xf32> to vector<16x128xf32>
    %19 = arith.mulf %9, %18 : vector<16x128xf32>
    %20 = vector.broadcast %2 : vector<1x128xf32> to vector<16x128xf32>
    %21 = arith.mulf %19, %20 : vector<16x128xf32>
    %22 = vector.broadcast %3 : vector<1x128xf32> to vector<16x128xf32>
    %23 = arith.addf %21, %22 : vector<16x128xf32>
    %c0_10 = arith.constant 0 : index
    %c0_11 = arith.constant 0 : index
    %24 = vector.load %arg4[%c0_10, %c0_11] : memref<128x384xf32, #tpu.memory_space<vmem>>, vector<128x384xf32>
    %cst_12 = arith.constant dense<0.000000e+00> : vector<16x384xf32>
    %25 = tpu.matmul %23, %24, %cst_12 {dimension_numbers = #tpu.dot_dimension_numbers<[1], [0], [0], [1], [0, 0, 1, 1], [], []>} : vector<16x128xf32>, vector<128x384xf32>, vector<16x384xf32> -> vector<16x384xf32>
    %26 = vector.extract_strided_slice %25 {offsets = [0, 128], sizes = [16, 64], strides = [1, 1]} : vector<16x384xf32> to vector<16x64xf32>
    %27 = vector.extract_strided_slice %25 {offsets = [0, 256], sizes = [16, 64], strides = [1, 1]} : vector<16x384xf32> to vector<16x64xf32>
    %28 = vector.extract_strided_slice %25 {offsets = [0, 0], sizes = [16, 64], strides = [1, 1]} : vector<16x384xf32> to vector<16x64xf32>
    %cst_13 = arith.constant dense<0.000000e+00> : vector<16x16xf32>
    %29 = tpu.matmul %28, %26, %cst_13 {dimension_numbers = #tpu.dot_dimension_numbers<[1], [1], [0], [0], [0, 0, 1, 0], [], []>} : vector<16x64xf32>, vector<16x64xf32>, vector<16x16xf32> -> vector<16x16xf32>
    %cst_14 = arith.constant dense<0xFF800000> : vector<16xf32>
    %30 = vector.multi_reduction <maximumf>, %29, %cst_14 [1] : vector<16x16xf32> to vector<16xf32>
    %31 = vector.shape_cast %30 : vector<16xf32> to vector<16x1xf32>
    %32 = vector.broadcast %31 : vector<16x1xf32> to vector<16x16xf32>
    %33 = arith.subf %29, %32 : vector<16x16xf32>
    %34 = math.exp %33 : vector<16x16xf32>
    %cst_15 = arith.constant dense<0.000000e+00> : vector<16xf32>
    %35 = vector.multi_reduction <add>, %34, %cst_15 [1] : vector<16x16xf32> to vector<16xf32>
    %36 = vector.shape_cast %35 : vector<16xf32> to vector<16x1xf32>
    %37 = vector.broadcast %36 : vector<16x1xf32> to vector<16x16xf32>
    %38 = arith.divf %34, %37 : vector<16x16xf32>
    %cst_16 = arith.constant dense<0.000000e+00> : vector<16x64xf32>
    %39 = tpu.matmul %38, %27, %cst_16 {dimension_numbers = #tpu.dot_dimension_numbers<[1], [0], [0], [1], [0, 0, 1, 1], [], []>} : vector<16x16xf32>, vector<16x64xf32>, vector<16x64xf32> -> vector<16x64xf32>
    %c0_17 = arith.constant 0 : index
    %c0_18 = arith.constant 0 : index
    %40 = vector.load %arg13[%c0_17, %c0_18] : memref<16x128xf32, #tpu.memory_space<vmem>>, vector<16x64xf32>
    tpu.vector_store %arg13[%c0_17, %c0_18], %39 {strides = array<i32>} : memref<16x128xf32, #tpu.memory_space<vmem>>, vector<16x64xf32>,
    %41 = vector.extract_strided_slice %25 {offsets = [0, 192], sizes = [16, 64], strides = [1, 1]} : vector<16x384xf32> to vector<16x64xf32>
    %42 = vector.extract_strided_slice %25 {offsets = [0, 320], sizes = [16, 64], strides = [1, 1]} : vector<16x384xf32> to vector<16x64xf32>
    %43 = vector.extract_strided_slice %25 {offsets = [0, 64], sizes = [16, 64], strides = [1, 1]} : vector<16x384xf32> to vector<16x64xf32>
    %cst_19 = arith.constant dense<0.000000e+00> : vector<16x16xf32>
    %44 = tpu.matmul %43, %41, %cst_19 {dimension_numbers = #tpu.dot_dimension_numbers<[1], [1], [0], [0], [0, 0, 1, 0], [], []>} : vector<16x64xf32>, vector<16x64xf32>, vector<16x16xf32> -> vector<16x16xf32>
    %cst_20 = arith.constant dense<0xFF800000> : vector<16xf32>
    %45 = vector.multi_reduction <maximumf>, %44, %cst_20 [1] : vector<16x16xf32> to vector<16xf32>
    %46 = vector.shape_cast %45 : vector<16xf32> to vector<16x1xf32>
    %47 = vector.broadcast %46 : vector<16x1xf32> to vector<16x16xf32>
    %48 = arith.subf %44, %47 : vector<16x16xf32>
    %49 = math.exp %48 : vector<16x16xf32>
    %cst_21 = arith.constant dense<0.000000e+00> : vector<16xf32>
    %50 = vector.multi_reduction <add>, %49, %cst_21 [1] : vector<16x16xf32> to vector<16xf32>
    %51 = vector.shape_cast %50 : vector<16xf32> to vector<16x1xf32>
    %52 = vector.broadcast %51 : vector<16x1xf32> to vector<16x16xf32>
    %53 = arith.divf %49, %52 : vector<16x16xf32>
    %cst_22 = arith.constant dense<0.000000e+00> : vector<16x64xf32>
    %54 = tpu.matmul %53, %42, %cst_22 {dimension_numbers = #tpu.dot_dimension_numbers<[1], [0], [0], [1], [0, 0, 1, 1], [], []>} : vector<16x16xf32>, vector<16x64xf32>, vector<16x64xf32> -> vector<16x64xf32>
    %c0_23 = arith.constant 0 : index
    %c64 = arith.constant 64 : index
    %55 = vector.load %arg13[%c0_23, %c64] : memref<16x128xf32, #tpu.memory_space<vmem>>, vector<16x64xf32>
    tpu.vector_store %arg13[%c0_23, %c64], %54 {strides = array<i32>} : memref<16x128xf32, #tpu.memory_space<vmem>>, vector<16x64xf32>,
    %c0_24 = arith.constant 0 : index
    %c0_25 = arith.constant 0 : index
    %56 = vector.load %arg13[%c0_24, %c0_25] : memref<16x128xf32, #tpu.memory_space<vmem>>, vector<16x128xf32>
    %c0_26 = arith.constant 0 : index
    %c0_27 = arith.constant 0 : index
    %57 = vector.load %arg5[%c0_26, %c0_27] : memref<128x128xf32, #tpu.memory_space<vmem>>, vector<128x128xf32>
    %cst_28 = arith.constant dense<0.000000e+00> : vector<16x128xf32>
    %58 = tpu.matmul %56, %57, %cst_28 {dimension_numbers = #tpu.dot_dimension_numbers<[1], [0], [0], [1], [0, 0, 1, 1], [], []>} : vector<16x128xf32>, vector<128x128xf32>, vector<16x128xf32> -> vector<16x128xf32>
    %59 = arith.addf %1, %58 : vector<16x128xf32>
    %c0_29 = arith.constant 0 : index
    %c0_30 = arith.constant 0 : index
    %60 = vector.load %arg6[%c0_29, %c0_30] : memref<1x128xf32, #tpu.memory_space<vmem>>, vector<1x128xf32>
    %c0_31 = arith.constant 0 : index
    %c0_32 = arith.constant 0 : index
    %61 = vector.load %arg7[%c0_31, %c0_32] : memref<1x128xf32, #tpu.memory_space<vmem>>, vector<1x128xf32>
    %cst_33 = arith.constant dense<0.000000e+00> : vector<16xf32>
    %62 = vector.multi_reduction <add>, %59, %cst_33 [1] : vector<16x128xf32> to vector<16xf32>
    %63 = vector.shape_cast %62 : vector<16xf32> to vector<16x1xf32>
    %cst_34 = arith.constant 1.280000e+02 : f32
    %64 = vector.broadcast %cst_34 : f32 to vector<16x1xf32>
    %65 = arith.divf %63, %64 : vector<16x1xf32>
    %66 = vector.broadcast %65 : vector<16x1xf32> to vector<16x128xf32>
    %67 = arith.subf %59, %66 : vector<16x128xf32>
    %68 = arith.mulf %67, %67 : vector<16x128xf32>
    %cst_35 = arith.constant dense<0.000000e+00> : vector<16xf32>
    %69 = vector.multi_reduction <add>, %68, %cst_35 [1] : vector<16x128xf32> to vector<16xf32>
    %70 = vector.shape_cast %69 : vector<16xf32> to vector<16x1xf32>
    %cst_36 = arith.constant 1.280000e+02 : f32
    %71 = vector.broadcast %cst_36 : f32 to vector<16x1xf32>
    %72 = arith.divf %70, %71 : vector<16x1xf32>
    %cst_37 = arith.constant 9.99999974E-6 : f32
    %73 = vector.broadcast %cst_37 : f32 to vector<16x1xf32>
    %74 = arith.addf %72, %73 : vector<16x1xf32>
    %75 = math.rsqrt %74 : vector<16x1xf32>
    %76 = vector.broadcast %75 : vector<16x1xf32> to vector<16x128xf32>
    %77 = arith.mulf %67, %76 : vector<16x128xf32>
    %78 = vector.broadcast %60 : vector<1x128xf32> to vector<16x128xf32>
    %79 = arith.mulf %77, %78 : vector<16x128xf32>
    %80 = vector.broadcast %61 : vector<1x128xf32> to vector<16x128xf32>
    %81 = arith.addf %79, %80 : vector<16x128xf32>
    %c0_38 = arith.constant 0 : index
    %c0_39 = arith.constant 0 : index
    %82 = vector.load %arg8[%c0_38, %c0_39] : memref<128x256xf32, #tpu.memory_space<vmem>>, vector<128x256xf32>
    %cst_40 = arith.constant dense<0.000000e+00> : vector<16x256xf32>
    %83 = tpu.matmul %81, %82, %cst_40 {dimension_numbers = #tpu.dot_dimension_numbers<[1], [0], [0], [1], [0, 0, 1, 1], [], []>} : vector<16x128xf32>, vector<128x256xf32>, vector<16x256xf32> -> vector<16x256xf32>
    %c0_41 = arith.constant 0 : index
    %c0_42 = arith.constant 0 : index
    %84 = vector.load %arg9[%c0_41, %c0_42] : memref<1x256xf32, #tpu.memory_space<vmem>>, vector<1x256xf32>
    %85 = vector.broadcast %84 : vector<1x256xf32> to vector<16x256xf32>
    %86 = arith.addf %83, %85 : vector<16x256xf32>
    %cst_43 = arith.constant 0.707106769 : f32
    %87 = vector.broadcast %cst_43 : f32 to vector<16x256xf32>
    %88 = arith.mulf %86, %87 : vector<16x256xf32>
    %cst_44 = arith.constant 0.000000e+00 : f32
    %89 = vector.broadcast %cst_44 : f32 to vector<16x256xf32>
    %90 = arith.cmpf oge, %88, %89 : vector<16x256xf32>
    %cst_45 = arith.constant 1.000000e+00 : f32
    %cst_46 = arith.constant -1.000000e+00 : f32
    %91 = vector.broadcast %cst_45 : f32 to vector<16x256xf32>
    %92 = vector.broadcast %cst_46 : f32 to vector<16x256xf32>
    %93 = arith.select %90, %91, %92 : vector<16x256xi1>, vector<16x256xf32>
    %94 = math.absf %88 : vector<16x256xf32>
    %cst_47 = arith.constant 0.327591091 : f32
    %95 = vector.broadcast %cst_47 : f32 to vector<16x256xf32>
    %96 = arith.mulf %95, %94 : vector<16x256xf32>
    %cst_48 = arith.constant 1.000000e+00 : f32
    %97 = vector.broadcast %cst_48 : f32 to vector<16x256xf32>
    %98 = arith.addf %97, %96 : vector<16x256xf32>
    %cst_49 = arith.constant 1.000000e+00 : f32
    %99 = vector.broadcast %cst_49 : f32 to vector<16x256xf32>
    %100 = arith.divf %99, %98 : vector<16x256xf32>
    %cst_50 = arith.constant 1.06140542 : f32
    %101 = vector.broadcast %cst_50 : f32 to vector<16x256xf32>
    %102 = arith.mulf %101, %100 : vector<16x256xf32>
    %cst_51 = arith.constant -1.45315206 : f32
    %103 = vector.broadcast %cst_51 : f32 to vector<16x256xf32>
    %104 = arith.addf %102, %103 : vector<16x256xf32>
    %105 = arith.mulf %104, %100 : vector<16x256xf32>
    %cst_52 = arith.constant 1.42141378 : f32
    %106 = vector.broadcast %cst_52 : f32 to vector<16x256xf32>
    %107 = arith.addf %105, %106 : vector<16x256xf32>
    %108 = arith.mulf %107, %100 : vector<16x256xf32>
    %cst_53 = arith.constant -0.284496725 : f32
    %109 = vector.broadcast %cst_53 : f32 to vector<16x256xf32>
    %110 = arith.addf %108, %109 : vector<16x256xf32>
    %111 = arith.mulf %110, %100 : vector<16x256xf32>
    %cst_54 = arith.constant 0.254829586 : f32
    %112 = vector.broadcast %cst_54 : f32 to vector<16x256xf32>
    %113 = arith.addf %111, %112 : vector<16x256xf32>
    %114 = arith.mulf %113, %100 : vector<16x256xf32>
    %cst_55 = arith.constant 0.000000e+00 : f32
    %115 = vector.broadcast %cst_55 : f32 to vector<16x256xf32>
    %116 = arith.subf %115, %94 : vector<16x256xf32>
    %117 = arith.mulf %116, %94 : vector<16x256xf32>
    %118 = math.exp %117 : vector<16x256xf32>
    %119 = arith.mulf %114, %118 : vector<16x256xf32>
    %cst_56 = arith.constant 1.000000e+00 : f32
    %120 = vector.broadcast %cst_56 : f32 to vector<16x256xf32>
    %121 = arith.subf %120, %119 : vector<16x256xf32>
    %122 = arith.mulf %93, %121 : vector<16x256xf32>
    %cst_57 = arith.constant 5.000000e-01 : f32
    %123 = vector.broadcast %cst_57 : f32 to vector<16x256xf32>
    %124 = arith.mulf %123, %86 : vector<16x256xf32>
    %cst_58 = arith.constant 1.000000e+00 : f32
    %125 = vector.broadcast %cst_58 : f32 to vector<16x256xf32>
    %126 = arith.addf %125, %122 : vector<16x256xf32>
    %127 = arith.mulf %124, %126 : vector<16x256xf32>
    %c0_59 = arith.constant 0 : index
    %c0_60 = arith.constant 0 : index
    %128 = vector.load %arg10[%c0_59, %c0_60] : memref<256x128xf32, #tpu.memory_space<vmem>>, vector<256x128xf32>
    %cst_61 = arith.constant dense<0.000000e+00> : vector<16x128xf32>
    %129 = tpu.matmul %127, %128, %cst_61 {dimension_numbers = #tpu.dot_dimension_numbers<[1], [0], [0], [1], [0, 0, 1, 1], [], []>} : vector<16x256xf32>, vector<256x128xf32>, vector<16x128xf32> -> vector<16x128xf32>
    %130 = arith.addf %59, %129 : vector<16x128xf32>
    %c0_62 = arith.constant 0 : index
    %c0_63 = arith.constant 0 : index
    %131 = vector.load %arg11[%c0_62, %c0_63] : memref<1x128xf32, #tpu.memory_space<vmem>>, vector<1x128xf32>
    %132 = vector.broadcast %131 : vector<1x128xf32> to vector<16x128xf32>
    %133 = arith.addf %130, %132 : vector<16x128xf32>
    %c0_64 = arith.constant 0 : index
    %c0_65 = arith.constant 0 : index
    %c0_66 = arith.constant 0 : index
    %134 = vector.load %arg12[%c0_64, %c0_65, %c0_66] : memref<1x16x128xf32, #tpu.memory_space<vmem>>, vector<1x16x128xf32>
    %135 = vector.shape_cast %134 : vector<1x16x128xf32> to vector<16x128xf32>
    %136 = vector.shape_cast %133 : vector<16x128xf32> to vector<1x16x128xf32>
    tpu.vector_store %arg12[%c0_64, %c0_65, %c0_66], %136 {strides = array<i32>} : memref<1x16x128xf32, #tpu.memory_space<vmem>>, vector<1x16x128xf32>,
    return
  }
  func.func @transform_0(%arg0: i32) -> (i32, i32, i32) {
    %c0_i32 = arith.constant 0 : i32
    %c0_i32_0 = arith.constant 0 : i32
    %c0_i32_1 = arith.constant 0 : i32
    return %arg0, %c0_i32, %c0_i32_0 : i32, i32, i32
  }
  func.func @transform_1(%arg0: i32) -> (i32, i32) {
    %c0_i32 = arith.constant 0 : i32
    %c0_i32_0 = arith.constant 0 : i32
    %c0_i32_1 = arith.constant 0 : i32
    return %c0_i32, %c0_i32_0 : i32, i32
  }
  func.func @transform_2(%arg0: i32) -> (i32, i32) {
    %c0_i32 = arith.constant 0 : i32
    %c0_i32_0 = arith.constant 0 : i32
    %c0_i32_1 = arith.constant 0 : i32
    return %c0_i32, %c0_i32_0 : i32, i32
  }
  func.func @transform_3(%arg0: i32) -> (i32, i32) {
    %c0_i32 = arith.constant 0 : i32
    %c0_i32_0 = arith.constant 0 : i32
    %c0_i32_1 = arith.constant 0 : i32
    return %c0_i32, %c0_i32_0 : i32, i32
  }
  func.func @transform_4(%arg0: i32) -> (i32, i32) {
    %c0_i32 = arith.constant 0 : i32
    %c0_i32_0 = arith.constant 0 : i32
    %c0_i32_1 = arith.constant 0 : i32
    return %c0_i32, %c0_i32_0 : i32, i32
  }
  func.func @transform_5(%arg0: i32) -> (i32, i32) {
    %c0_i32 = arith.constant 0 : i32
    %c0_i32_0 = arith.constant 0 : i32
    %c0_i32_1 = arith.constant 0 : i32
    return %c0_i32, %c0_i32_0 : i32, i32
  }
  func.func @transform_6(%arg0: i32) -> (i32, i32) {
    %c0_i32 = arith.constant 0 : i32
    %c0_i32_0 = arith.constant 0 : i32
    %c0_i32_1 = arith.constant 0 : i32
    return %c0_i32, %c0_i32_0 : i32, i32
  }
  func.func @transform_7(%arg0: i32) -> (i32, i32) {
    %c0_i32 = arith.constant 0 : i32
    %c0_i32_0 = arith.constant 0 : i32
    %c0_i32_1 = arith.constant 0 : i32
    return %c0_i32, %c0_i32_0 : i32, i32
  }
  func.func @transform_8(%arg0: i32) -> (i32, i32) {
    %c0_i32 = arith.constant 0 : i32
    %c0_i32_0 = arith.constant 0 : i32
    %c0_i32_1 = arith.constant 0 : i32
    return %c0_i32, %c0_i32_0 : i32, i32
  }
  func.func @transform_9(%arg0: i32) -> (i32, i32) {
    %c0_i32 = arith.constant 0 : i32
    %c0_i32_0 = arith.constant 0 : i32
    %c0_i32_1 = arith.constant 0 : i32
    return %c0_i32, %c0_i32_0 : i32, i32
  }
  func.func @transform_10(%arg0: i32) -> (i32, i32) {
    %c0_i32 = arith.constant 0 : i32
    %c0_i32_0 = arith.constant 0 : i32
    %c0_i32_1 = arith.constant 0 : i32
    return %c0_i32, %c0_i32_0 : i32, i32
  }
  func.func @transform_11(%arg0: i32) -> (i32, i32, i32) {
    %c0_i32 = arith.constant 0 : i32
    %c0_i32_0 = arith.constant 0 : i32
    %c0_i32_1 = arith.constant 0 : i32
    return %arg0, %c0_i32, %c0_i32_0 : i32, i32, i32
  }
}

</mosaic_0001>

<bundles_post_ra>
// kernel: tpu_custom_call.1
= control target key start
LH: loop header
LB: loop body
LE: loop exit
PB: predicated region body
PF: predicated region fallthrough
CT: control target
= control target key end

     0   :  { %7 = vsyncpa [#allocation3], 0  ;;  %s170_s0 = inlined_call_operand.hbm [shape: f32[8,128], index: 0, kind: input, shape index: {}]   ;;  %s171_s1 = inlined_call_operand.hbm [shape: f32[8,128], index: 1, kind: input, shape index: {}]   ;;  %s172_s2 = inlined_call_operand.hbm [shape: f32[8,128], index: 2, kind: output, shape index: {}]  }
   0x1   :  { %8 = vsyncpa [#allocation6], 0 }
   0x2   :  { %9 = vsyncpa [#allocation4], 0  ;;  %s15_s11 = sshll.u32 %s170_s0, 4  ;;  %s143_s12 = smov [#allocation2]   ;;  %s16_s11 = int_to_ptr.hbm [resolvable:$true] %s15_s11 }
   0x3   :  { %s17_s13 = sshll.u32 %s143_s12, 4  ;;  %s26_s16 = sshll.u32 %s171_s1, 4  ;;  %s18_s13 = int_to_ptr.vmem [resolvable:$true] %s17_s13  ;;  %s27_s16 = int_to_ptr.hbm [resolvable:$true] %s26_s16 }
   0x4   :  { %20 = dma.hbm_to_vmem [thread:$0]  %s16_s11, 128, %s18_s13, [#allocation3]  }
   0x5   :  { %s144_s17 = smov [#allocation5]  }
   0x6   :  { %s28_s18 = sshll.u32 %s144_s17, 4  ;;  %s29_s18 = int_to_ptr.vmem [resolvable:$true] %s28_s18 }
   0x7   :  { %31 = dma.hbm_to_vmem [thread:$0]  %s27_s16, 128, %s29_s18, [#allocation6]  }
   0x8   :  { %137 = dma.done.wait [#allocation3], 128  }
   0x9   :  { %138 = vsyncadd [#allocation3], 4294967168 }
   0xa   :  { %139 = dma.done.wait [#allocation6], 128  }
   0xb   :  { %140 = vsyncadd [#allocation6], 4294967168  ;;  %s145_s19 = smov [#allocation7]   ;;  %s51_s22 = sshll.u32 %s172_s2, 4  ;;  %v40_v0 = vld [vmem:[#allocation2] sm:$0xff]  ;;  %v41_v1 = vld [vmem:[#allocation5] sm:$0xff]  ;;  %s52_s22 = int_to_ptr.hbm [resolvable:$true] %s51_s22 }
   0xc   :  { %s49_s0 = sshll.u32 %s145_s19, 4  ;;  %v42_v2 = vadd.f32 %v41_v1, %v40_v0  ;;  %s50_s0 = int_to_ptr.vmem [resolvable:$true] %s49_s0 }
   0xe   :  { %43 = vst [vmem:[#allocation7] sm:$0xff] %v42_v2 }
   0xf   :  { %54 = dma.vmem_to_hbm [thread:$0]  %s50_s0, 128, %s52_s22, [#allocation4]  }
  0x10   :  { %141 = dma.done.wait [#allocation4], 128  }
  0x11   :  { %142 = vsyncadd [#allocation4], 4294967168 }
  0x12   :  { %59 = vsyncpa [#allocation3], 1 }
  0x13   :  { %60 = vsyncpa [#allocation6], 1 }
  0x14   :  { %61 = vsyncpa [#allocation4], 1 }

// kernel: tpu_custom_call.1
= control target key start
LH: loop header
LB: loop body
LE: loop exit
PB: predicated region body
PF: predicated region fallthrough
CT: control target
= control target key end

     0   :  { %s2413_s0 = inlined_call_operand.hbm [shape: f32[2,16,128], index: 0, kind: input, shape index: {}]   ;;  %s2414_s1 = inlined_call_operand.hbm [shape: f32[1,128], index: 1, kind: input, shape index: {}]   ;;  %s2415_s2 = inlined_call_operand.vmem [shape: f32[1,128], index: 2, kind: input, shape index: {}]   ;;  %s2416_s3 = inlined_call_operand.hbm [shape: f32[128,384], index: 3, kind: input, shape index: {}]   ;;  %s2417_s4 = inlined_call_operand.hbm [shape: f32[128,128], index: 4, kind: input, shape index: {}]   ;;  %s2418_s5 = inlined_call_operand.vmem [shape: f32[1,128], index: 5, kind: input, shape index: {}]   ;;  %s2419_s6 = inlined_call_operand.vmem [shape: f32[1,128], index: 6, kind: input, shape index: {}]   ;;  %s2420_s7 = inlined_call_operand.hbm [shape: f32[128,256], index: 7, kind: input, shape index: {}]   ;;  %s2421_s8 = inlined_call_operand.vmem [shape: f32[1,256], index: 8, kind: input, shape index: {}]   ;;  %s2422_s9 = inlined_call_operand.hbm [shape: f32[256,128], index: 9, kind: input, shape index: {}]   ;;  %s2423_s10 = inlined_call_operand.vmem [shape: f32[1,128], index: 10, kind: input, shape index: {}]   ;;  %s2424_s11 = inlined_call_operand.hbm [shape: f32[2,16,128], index: 11, kind: output, shape index: {}]  }
   0x1   :  { %2427 = sst [smem:[#allocation20_spill]] %s2414_s1 }
   0x2   :  { %2428 = sst [smem:[#allocation21_spill]] %s2416_s3 }
   0x3   :  { %2429 = sst [smem:[#allocation22_spill]] %s2417_s4 }
   0x4   :  { %2430 = sst [smem:[#allocation23_spill]] %s2420_s7 }
   0x5   :  { %2431 = sst [smem:[#allocation24_spill]] %s2422_s9 }
   0x6   :  { %16 = vsyncpa [#allocation4], 0 }
   0x7   :  { %18 = vsyncpa [#allocation4 + $0x1], 0 }
   0x8   :  { %19 = vsyncpa [#allocation7], 0 }
   0x9   :  { %20 = vsyncpa [#allocation10], 0 }
   0xa   :  { %21 = vsyncpa [#allocation13], 0 }
   0xb   :  { %22 = vsyncpa [#allocation5], 0 }
   0xc   :  { %24 = vsyncpa [#allocation5 + $0x1], 0  ;;  %s2031_s17 = smov 0   ;;  %s2033_s18 = smov 0  }
   0xd   :  { %s2035_s19 = smov 0   ;;  %s2037_s20 = smov 0  }
   0xe LB: > { %s2432_s1 = sld [smem:[#allocation20_spill]]  ;;  %s2055_s24 = sadd.s32 4294967295, %s1953_s20   ;;  %s1953_s20 = sphi %s2037_s20, %s2449_s20   ;;  %s1949_s19 = sphi %s2035_s19, %s2448_s19   ;;  %s1945_s18 = sphi %s2033_s18, %s2447_s18   ;;  %s1941_s17 = sphi %s2031_s17, %s2446_s17  }
   0xf   : > { %p1482_p0 = scmp.ge.s32.totalorder %s1953_s20, 1  ;;  %p51_p1 = scmp.eq.s32.totalorder %s2055_s24, 0 }
  0x10   : > { %p297_p2 = scmp.lt.s32.totalorder %s1953_s20, 3  ;;  %s1955_s26 = smov [#allocation6]  }
  0x11   : > { %s311_s27 = sshll.u32 %s1955_s26, 4  ;;  %s2434_s4 = sld [smem:[#allocation22_spill]]  ;;  %s312_s27 = int_to_ptr.vmem [resolvable:$true] %s311_s27 }
  0x12   : > { %p2060_p3 = pnand %p1482_p0, %p297_p2  ;;  %s1956_s13 = smov [#allocation9]  }
  0x13   : > { %s339_s14 = sshll.u32 %s1956_s13, 4  ;;  %s2425_s15 = smov 128   ;;  %s340_s14 = int_to_ptr.vmem [resolvable:$true] %s339_s14 }
  0x14   : > { %s309_s23 = sshll.u32 %s2432_s1, 4  ;;  %p1559_p5 = pneg %p2060_p3  ;;  %s310_s23 = int_to_ptr.hbm [resolvable:$true] %s309_s23 }
  0x15   : > { %s2426_s16 = smov 8   ;;  %s2436_s3 = sld [smem:[#allocation21_spill]] }
  0x16   : > { %p2072_p6 = pnand %p1559_p5, %p51_p1  ;;  %s1959_s28 = smov [#allocation8]  }
  0x17   : > { %s337_s30 = sshll.u32 %s2434_s4, 4  ;;  %s325_s29 = sshll.u32 %s1959_s28, 4  ;;  %s338_s30 = int_to_ptr.hbm [resolvable:$true] %s337_s30  ;;  %s326_s29 = int_to_ptr.vmem [resolvable:$true] %s325_s29 }
  0x18   : > { %1562 = dma.hbm_to_vmem [thread:$0]  (!%p2072_p6), %s310_s23, 16, %s312_s27, [#allocation7]  }
  0x19   : > { %1568 = dma.hbm_to_vmem [thread:$0]  (!%p2072_p6), %s338_s30, 2048, %s340_s14, [#allocation10], %s2425_s15, %s2425_s15, %s2426_s16  }
  0x1a   : > { %s2437_s7 = sld [smem:[#allocation23_spill]]  ;;  %s1960_s27 = smov 384  }
  0x1b   : > { %s323_s26 = sshll.u32 %s2436_s3, 4  ;;  %s1961_s4 = smov 24   ;;  %s324_s26 = int_to_ptr.hbm [resolvable:$true] %s323_s26 }
  0x1c   : > { %1565 = dma.hbm_to_vmem [thread:$0]  (!%p2072_p6), %s324_s26, 6144, %s326_s29, [#allocation7], %s1960_s27, %s1960_s27, %s1961_s4  }
  0x1d   : > { %s1962_s30 = smov [#allocation11]   ;;  %s1963_s21 = smov 256  }
  0x1e   : > { %s359_s14 = sshll.u32 %s1962_s30, 4  ;;  %s1964_s1 = smov 16   ;;  %s360_s14 = int_to_ptr.vmem [resolvable:$true] %s359_s14 }
  0x1f   : > { %s2438_s9 = sld [smem:[#allocation24_spill]]  ;;  %s1965_s26 = smov [#allocation12]  }
  0x20   : > { %s357_s23 = sshll.u32 %s2437_s7, 4  ;;  %s376_s29 = sshll.u32 %s1965_s26, 4  ;;  %s358_s23 = int_to_ptr.hbm [resolvable:$true] %s357_s23  ;;  %s377_s29 = int_to_ptr.vmem [resolvable:$true] %s376_s29 }
  0x21   : > { %1571 = dma.hbm_to_vmem [thread:$0]  (!%p2072_p6), %s358_s23, 4096, %s360_s14, [#allocation10], %s1963_s21, %s1963_s21, %s1964_s1  }
  0x22   : > { %s1481_s13 = sadd.s32 4294967294, %s1953_s20   ;;  %s2103_s27 = sadd.s32 1, %s1953_s20  }
  0x23   : > { %s37_s23 = sadd.s32 1, %s1949_s19  ;;  %s34_s30 = ssub.s32 %s1953_s20, %s2103_s27 }
  0x24   : > { %p44_p7 = scmp.ne.s32.totalorder %s1949_s19, %s1945_s18  ;;  %p35_p8 = scmp.eq.s32.totalorder %s34_s30, 0 }
  0x25   : > { %s374_s4 = sshll.u32 %s2438_s9, 4  ;;  %p45_p9 = scmp.eq.s32.totalorder %s1953_s20, 0  ;;  %s375_s4 = int_to_ptr.hbm [resolvable:$true] %s374_s4 }
  0x26   : > { %1574 = dma.hbm_to_vmem [thread:$0]  (!%p2072_p6), %s375_s4, 4096, %s377_s29, [#allocation13], %s2425_s15, %s2425_s15, %s2426_s16  }
  0x27   : > { %p50_p10 = scmp.ne.s32.totalorder %s1945_s18, %s1941_s17  ;;  %p284_p11 = scmp.eq.s32.totalorder %s2055_s24, 1 }
  0x28   : > { %s2115_s14 = scalar_select %p35_p8, %s1949_s19, %s37_s23  }
  0x29   : > { %p2119_p12 = por %p51_p1, %p50_p10  ;;  %p2123_p13 = por %p284_p11, %p44_p7 }
  0x2a   : > { %p290_p0 = scmp.eq.s32.totalorder %s1481_s13, 1  ;;  %p46_p2 = por %p45_p9, %p44_p7 }
  0x2b   : > { %s393_s1 = sand.u32 1, %s1949_s19   ;;  %p1588_p6 = scmp.lt.s32.totalorder %s1953_s20, 2 }
  0x2c   : > { %p2128_p5 = por %p290_p0, %p50_p10  ;;  %s1489_s28 = sshll.u32 %s393_s1, 4 }
  0x2d   : > { %s1517_s4 = sshll.u32 %s1953_s20, 4  ;;  %s397_s15 = scalar_lea.vmem [#allocation3], %s1489_s28 }
  0x2e   : > { %s402_s23 = scalar_lea.hbm %s2413_s0, %s1517_s4  ;;  %s405_s16 = sshll.u32 %s397_s15, 4  ;;  %s406_s16 = int_to_ptr.vmem [resolvable:$true] %s405_s16 }
  0x2f   : > { %s403_s30 = sshll.u32 %s402_s23, 4  ;;  %p2137_p8 = pnand %p1588_p6, %p46_p2  ;;  %s404_s30 = int_to_ptr.hbm [resolvable:$true] %s403_s30 }
  0x30   : > { %s394_s3 = scalar_lea.sflag [#allocation4], %s393_s1  ;;  %s1845_s7 = sshra.s32 %s404_s30, 4  ;;  %s1846_s7 = int_to_ptr.hbm [resolvable:$true] %s1845_s7 }
  0x31   : > { %s1847_s9 = scalar_lea.hbm %s1846_s7, 16  ;;  %p1849_p9 = pneg %p2137_p8 }
  0x32   : > { %p1848_p7 = scmp.ne.s32.totalorder %s1846_s7, %s1847_s9  ;;  %s1852_s15 = scalar_lea.hbm %s2413_s0, 32 }
  0x33   : > { %p1853_p0 = scmp.lt.s32.totalorder %s1846_s7, %s2413_s0  ;;  %p1854_p2 = scmp.lt.s32.totalorder %s1852_s15, %s1847_s9 }
  0x34   : > { %p1850_p10 = pnand %p1849_p9, %p1848_p7 }
  0x35   : > { %p1855_p6 = por %p1854_p2, %p1853_p0 }
  0x36   : > { %p1851_p11 = pneg %p1850_p10 }
  0x38   : > { %p1856_p4 = pnand %p1855_p6, %p1851_p11 }
  0x3a   : > { %1859 = shalt.err (!%p1856_p4)
}
  0x3b   : > { %s2443_s1 = smov 8   ;;  %s2444_s23 = smov 128  }
  0x3c   : > { %1578 = dma.hbm_to_vmem [thread:$0]  (!%p2137_p8), %s404_s30, 256, %s406_s16, %s394_s3, %s2444_s23, %s2444_s23, %s2443_s1  }
  0x3d   : > { %417 = sbr.rel (%p2060_p3) target bundleno = 2270 (0x8de), region = 64  ;;  %s2157_s4 = sand.u32 (!%p2060_p3), 1, %s1945_s18  }
  0x3e   : > { %s1493_s7 = sshll.u32 (!%p2060_p3), %s2157_s4, 4  ;;  %s420_s9 = scalar_lea.sflag (!%p2060_p3), [#allocation4], %s2157_s4 }
  0x3f   : > { %s423_s26 = scalar_lea.vmem (!%p2060_p3), [#allocation3], %s1493_s7 }
  0x42   : > { %1920 = dma.done.wait (%p2119_p12), %s420_s9, 256  }
  0x43   : > { %1922 = vsyncadd (%p2119_p12), %s420_s9, 4294967040 }
  0x44   : > { %1924 = dma.done.wait (%p51_p1), [#allocation7], 6160  }
  0x45   : > { %1926 = vsyncadd (%p51_p1), [#allocation7], 4294961136 }
  0x46   : > { %1928 = dma.done.wait (%p51_p1), [#allocation10], 6144  }
  0x47   : > { %1930 = vsyncadd (%p51_p1), [#allocation10], 4294961152 }
  0x48   : > { %1932 = dma.done.wait (%p51_p1), [#allocation13], 4096  }
  0x49   : > { %1934 = vsyncadd (%p51_p1), [#allocation13], 4294963200  ;;  %v2179_v0 = vld [vmem:[%s423_s26] sm:$0xff]  ;;  %v2182_v1 = vld [vmem:[%s423_s26 + $0x8] sm:$0xff]  ;;  %v1966_v2 = vmov 128.0   ;;  %vm666_vm7 = vcmask 523264  }
  0x4a   : > { %492 = vadd.xlane.f32.xlu0 %v2179_v0  ;;  %1653 = vrcp.f32 %v1966_v2  ;;  %v594_v5 = vld [vmem:[#allocation8 + $0x168] sm:$0xff]  ;;  %v595_v6 = vld [vmem:[#allocation8 + $0x170] sm:$0xff]  ;;  %v596_v7 = vld [vmem:[#allocation8 + $0x178] sm:$0xff]  ;;  %vm702_vm8 = vcmask 130048   ;;  %s1967_s16 = smov 64   ;;  %s487_s9 = scalar_lea.vmem [#allocation14], %s1493_s7 }
  0x4b   : > { %597 = vmatpush.msra.mxu0 %v594_v5  ;;  %620 = vmatpush.msra.mxu1 %v595_v6  ;;  %v591_v8 = vld [vmem:[#allocation8 + $0x150] sm:$0xff]  ;;  %v592_v9 = vld [vmem:[#allocation8 + $0x158] sm:$0xff]  ;;  %v593_v10 = vld [vmem:[#allocation8 + $0x160] sm:$0xff]  ;;  %s1518_s26 = sshll.u32 %s2055_s24, 4  ;;  %s1357_s12 = sshll.u32 %s487_s9, 4  ;;  %s1358_s12 = int_to_ptr.vmem [resolvable:$true] %s1357_s12 }
  0x4c   : > { %643 = vmatpush.msra.mxu2 %v596_v7  ;;  %v588_v23 = vld [vmem:[#allocation8 + $0x138] sm:$0xff]  ;;  %v589_v24 = vld [vmem:[#allocation8 + $0x140] sm:$0xff]  ;;  %v590_v25 = vld [vmem:[#allocation8 + $0x148] sm:$0xff]  ;;  %s1345_s13 = scalar_lea.sflag [#allocation5], %s2157_s4  ;;  %s1895_s29 = scalar_lea.hbm %s2424_s11, 32 }
  0x4d   : > { %598 = vmatpush.msra.mxu0 %v591_v8  ;;  %621 = vmatpush.msra.mxu1 %v592_v9  ;;  %v585_v26 = vld [vmem:[#allocation8 + $0x120] sm:$0xff]  ;;  %v586_v27 = vld [vmem:[#allocation8 + $0x128] sm:$0xff]  ;;  %v587_v28 = vld [vmem:[#allocation8 + $0x130] sm:$0xff] }
  0x4e   : > { %644 = vmatpush.msra.mxu2 %v593_v10  ;;  %v582_v29 = vld [vmem:[#allocation8 + $0x108] sm:$0xff]  ;;  %v583_v30 = vld [vmem:[#allocation8 + $0x110] sm:$0xff]  ;;  %v584_v31 = vld [vmem:[#allocation8 + $0x118] sm:$0xff] }
  0x4f   : > { %599 = vmatpush.msra.mxu0 %v588_v23  ;;  %622 = vmatpush.msra.mxu1 %v589_v24  ;;  %v579_v32 = vld [vmem:[#allocation8 + $0xf0] sm:$0xff]  ;;  %v580_v33 = vld [vmem:[#allocation8 + $0xf8] sm:$0xff]  ;;  %v581_v34 = vld [vmem:[#allocation8 + $0x100] sm:$0xff] }
  0x50   : > { %v1654_v3 = vpop.eup %1653  ;;  %645 = vmatpush.msra.mxu2 %v590_v25  ;;  %v576_v35 = vld [vmem:[#allocation8 + $0xd8] sm:$0xff]  ;;  %v577_v36 = vld [vmem:[#allocation8 + $0xe0] sm:$0xff]  ;;  %v578_v37 = vld [vmem:[#allocation8 + $0xe8] sm:$0xff] }
  0x51   : > { %v497_v4 = vmul.f32 128.0, %v1654_v3  ;;  %vm501_vm0 = vweird.f32 %v1654_v3  ;;  %600 = vmatpush.msra.mxu0 %v585_v26  ;;  %623 = vmatpush.msra.mxu1 %v586_v27  ;;  %v573_v38 = vld [vmem:[#allocation8 + $0xc0] sm:$0xff]  ;;  %v574_v39 = vld [vmem:[#allocation8 + $0xc8] sm:$0xff]  ;;  %v575_v40 = vld [vmem:[#allocation8 + $0xd0] sm:$0xff] }
  0x52   : > { %494 = vadd.xlane.f32.xlu0 %v2182_v1  ;;  %646 = vmatpush.msra.mxu2 %v587_v28  ;;  %v570_v41 = vld [vmem:[#allocation8 + $0xa8] sm:$0xff]  ;;  %v571_v42 = vld [vmem:[#allocation8 + $0xb0] sm:$0xff]  ;;  %v572_v43 = vld [vmem:[#allocation8 + $0xb8] sm:$0xff] }
  0x53   : > { %v498_v11 = vsub.f32 1.0, %v497_v4  ;;  %601 = vmatpush.msra.mxu0 %v582_v29  ;;  %624 = vmatpush.msra.mxu1 %v583_v30  ;;  %v567_v44 = vld [vmem:[#allocation8 + $0x90] sm:$0xff]  ;;  %v568_v45 = vld [vmem:[#allocation8 + $0x98] sm:$0xff]  ;;  %v569_v46 = vld [vmem:[#allocation8 + $0xa0] sm:$0xff] }
  0x54   : > { %647 = vmatpush.msra.mxu2 %v584_v31  ;;  %v564_v47 = vld [vmem:[#allocation8 + $0x78] sm:$0xff]  ;;  %v565_v48 = vld [vmem:[#allocation8 + $0x80] sm:$0xff]  ;;  %v566_v49 = vld [vmem:[#allocation8 + $0x88] sm:$0xff] }
  0x55   : > { %v499_v12 = vmul.f32 %v1654_v3, %v498_v11  ;;  %602 = vmatpush.msra.mxu0 %v579_v32  ;;  %625 = vmatpush.msra.mxu1 %v580_v33  ;;  %v561_v50 = vld [vmem:[#allocation8 + $0x60] sm:$0xff]  ;;  %v562_v51 = vld [vmem:[#allocation8 + $0x68] sm:$0xff]  ;;  %v563_v52 = vld [vmem:[#allocation8 + $0x70] sm:$0xff] }
  0x56   : > { %648 = vmatpush.msra.mxu2 %v581_v34  ;;  %v558_v53 = vld [vmem:[#allocation8 + $0x48] sm:$0xff]  ;;  %v559_v54 = vld [vmem:[#allocation8 + $0x50] sm:$0xff]  ;;  %v560_v55 = vld [vmem:[#allocation8 + $0x58] sm:$0xff] }
  0x57   : > { %v500_v13 = vadd.f32 %v1654_v3, %v499_v12  ;;  %603 = vmatpush.msra.mxu0 %v576_v35  ;;  %626 = vmatpush.msra.mxu1 %v577_v36  ;;  %v555_v56 = vld [vmem:[#allocation8 + $0x30] sm:$0xff]  ;;  %v556_v57 = vld [vmem:[#allocation8 + $0x38] sm:$0xff]  ;;  %v557_v58 = vld [vmem:[#allocation8 + $0x40] sm:$0xff] }
  0x58   : > { %649 = vmatpush.msra.mxu2 %v578_v37  ;;  %v552_v59 = vld [vmem:[#allocation8 + $0x18] sm:$0xff]  ;;  %v553_v60 = vld [vmem:[#allocation8 + $0x20] sm:$0xff]  ;;  %v554_v61 = vld [vmem:[#allocation8 + $0x28] sm:$0xff] }
  0x59   : > { %v2185_v14 = vsel %vm501_vm0, %v1654_v3, %v500_v13  ;;  %604 = vmatpush.msra.mxu0 %v573_v38  ;;  %627 = vmatpush.msra.mxu1 %v574_v39  ;;  %v549_v62 = vld [vmem:[#allocation8] sm:$0xff]  ;;  %v550_v63 = vld [vmem:[#allocation8 + $0x8] sm:$0xff]  ;;  %v551_v2 = vld [vmem:[#allocation8 + $0x10] sm:$0xff] }
  0x5a   : > { %650 = vmatpush.msra.mxu2 %v575_v40  ;;  %v1649_v24 = vld [vmem:[%s2415_s2] ss:$0 sm:$0xff] }
  0x5b   : > { %605 = vmatpush.msra.mxu0 %v570_v41  ;;  %628 = vmatpush.msra.mxu1 %v571_v42 }
  0x5c   : > { %651 = vmatpush.msra.mxu2 %v572_v43 }
  0x5d   : > { %606 = vmatpush.msra.mxu0 %v567_v44  ;;  %629 = vmatpush.msra.mxu1 %v568_v45 }
  0x5e   : > { %652 = vmatpush.msra.mxu2 %v569_v46 }
  0x5f   : > { %607 = vmatpush.msra.mxu0 %v564_v47  ;;  %630 = vmatpush.msra.mxu1 %v565_v48 }
  0x60   : > { %653 = vmatpush.msra.mxu2 %v566_v49 }
  0x61   : > { %608 = vmatpush.msra.mxu0 %v561_v50  ;;  %631 = vmatpush.msra.mxu1 %v562_v51 }
  0x62   : > { %654 = vmatpush.msra.mxu2 %v563_v52 }
  0x63   : > { %609 = vmatpush.msra.mxu0 %v558_v53  ;;  %632 = vmatpush.msra.mxu1 %v559_v54 }
  0x64   : > { %655 = vmatpush.msra.mxu2 %v560_v55 }
  0x65   : > { %610 = vmatpush.msra.mxu0 %v555_v56  ;;  %633 = vmatpush.msra.mxu1 %v556_v57 }
  0x66   : > { %656 = vmatpush.msra.mxu2 %v557_v58 }
  0x67   : > { %611 = vmatpush.msra.mxu0 %v552_v59  ;;  %634 = vmatpush.msra.mxu1 %v553_v60 }
  0x68   : > { %657 = vmatpush.msra.mxu2 %v554_v61 }
  0x69   : > { %612 = vmatpush.msra.mxu0 %v549_v62  ;;  %635 = vmatpush.msra.mxu1 %v550_v63 }
  0x6a   : > { %658 = vmatpush.msra.mxu2 %v551_v2 }
  0xbd   : > { %v493_v15 = vpop.xlane.xlu0 %492 }
  0xbe   : > { %v503_v16 = vmul.f32 %v2185_v14, %v493_v15 }
  0xc0   : > { %v2189_v17 = vsub.f32 %v2179_v0, %v503_v16 }
  0xc2   : > { %v507_v18 = vmul.f32 %v2189_v17, %v2189_v17 }
  0xc4   : > { %509 = vadd.xlane.f32.xlu1 %v507_v18 }
  0xc5   : > { %v495_v19 = vpop.xlane.xlu0 %494 }
  0xc6   : > { %v504_v20 = vmul.f32 %v2185_v14, %v495_v19  ;;  %v1648_v19 = vld [vmem:[#allocation6] ss:$0 sm:$0xff] }
  0xc8   : > { %v2195_v21 = vsub.f32 %v2182_v1, %v504_v20 }
  0xca   : > { %v508_v22 = vmul.f32 %v2195_v21, %v2195_v21 }
  0xcc   : > { %511 = vadd.xlane.f32.xlu1 %v508_v22 }
 0x137   : > { %v510_v3 = vpop.xlane.xlu1 %509 }
 0x138   : > { %v513_v4 = vmul.f32 %v510_v3, %v2185_v14 }
 0x13a   : > { %v515_v5 = vadd.f32 1e-05, %v513_v4 }
 0x13c   : > { %1655 = vrsqrt.f32 %v515_v5  ;;  %vm523_vm2 = vweird.f32 %v515_v5 }
 0x13f   : > { %v512_v6 = vpop.xlane.xlu1 %511 }
 0x140   : > { %v514_v7 = vmul.f32 %v512_v6, %v2185_v14 }
 0x142   : > { %v1656_v8 = vpop.eup %1655  ;;  %v516_v9 = vadd.f32 1e-05, %v514_v7 }
 0x143   : > { %v518_v10 = vmul.f32 %v1656_v8, %v515_v5  ;;  %vm524_vm1 = vweird.f32 %v1656_v8 }
 0x144   : > { %1657 = vrsqrt.f32 %v516_v9  ;;  %vm525_vm3 = vmor %vm523_vm2, %vm524_vm1  ;;  %vm533_vm5 = vweird.f32 %v516_v9 }
 0x145   : > { %v519_v11 = vmul.f32 %v1656_v8, %v518_v10 }
 0x147   : > { %v520_v12 = vmul.f32 0.5, %v519_v11 }
 0x149   : > { %v521_v13 = vsub.f32 1.5, %v520_v12 }
 0x14a   : > { %v1658_v15 = vpop.eup %1657 }
 0x14b   : > { %v522_v16 = vmul.f32 %v1656_v8, %v521_v13  ;;  %v528_v18 = vmul.f32 %v1658_v15, %v516_v9  ;;  %vm534_vm4 = vweird.f32 %v1658_v15 }
 0x14c   : > { %vm535_vm6 = vmor %vm533_vm5, %vm534_vm4 }
 0x14d   : > { %v526_v20 = vsel %vm525_vm3, %v1656_v8, %v522_v16  ;;  %v529_v22 = vmul.f32 %v1658_v15, %v528_v18 }
 0x14e   : > { %v537_v23 = vmul.f32 %v526_v20, %v2189_v17 }
 0x14f   : > { %v530_v25 = vmul.f32 0.5, %v529_v22 }
 0x150   : > { %v542_v26 = vmul.f32 %v1648_v19, %v537_v23 }
 0x151   : > { %v531_v27 = vsub.f32 1.5, %v530_v25 }
 0x152   : > { %v547_v28 = vadd.f32 %v1649_v24, %v542_v26 }
 0x153   : > { %v532_v29 = vmul.f32 %v1658_v15, %v531_v27 }
 0x154   : > { %613 = vmatmul.f32.vlgmr.msra.gmra.mxu0 %v547_v28  ;;  %636 = vmatmul.f32.vlgmr.msra.gmra.mxu1 %v547_v28 }
 0x155   : > { %v536_v30 = vsel %vm535_vm6, %v1658_v15, %v532_v29  ;;  %659 = vmatmul.f32.vlgmr.msra.gmra.mxu2 %v547_v28 }
 0x156   : > { %v538_v31 = vmul.f32 %v536_v30, %v2195_v21 }
 0x158   : > { %v543_v32 = vmul.f32 %v1648_v19, %v538_v31 }
 0x15a   : > { %v548_v17 = vadd.f32 %v1649_v24, %v543_v32 }
 0x15c   : > { %616 = vmatmul.f32.gmra.mxu0 %v548_v17  ;;  %639 = vmatmul.f32.gmra.mxu1 %v548_v17 }
 0x15d   : > { %662 = vmatmul.f32.gmra.mxu2 %v548_v17 }
 0x1d1   : > { %v637_v33 = vpop.f32.mrf.mxu1  ;;  %v614_v36 = vpop.f32.mrf.mxu0 }
 0x1d8   : > { %v2206_v34 = vpop.f32.mrf.mxu2 }
 0x1d9   : > { %v640_v35 = vpop.f32.mrf.mxu1  ;;  %v617_v21 = vpop.f32.mrf.mxu0 }
 0x1da   : > { %1500 = vmatpush.xpose.msk.msra.mxu3 %vm666_vm7, %v640_v35 }
 0x1de   : > { %1501 = vmatpush.xpose.msk.msra.mxu3 %vm666_vm7, %v637_v33 }
 0x1e0   : > { %v2210_v37 = vpop.f32.mrf.mxu2 }
 0x1e1   : > { %1502 = vmatmul.msk.f32.vlgmr.msra.gmra.mxu3 %vm666_vm7, %v614_v36  ;;  %v1643_v27 = vpack.i.bf16 %v2206_v34, %v2210_v37 }
 0x1e2   : > { %771 = vmatpush.msrb.mxu3 %v2210_v37 }
 0x1e4   : > { %772 = vmatpush.msrb.mxu3 %v2206_v34 }
 0x1e9   : > { %1503 = vmatmul.msk.f32.gmra.mxu3 %vm666_vm7, %v617_v21 }
 0x264   : > { %v696_v38 = vpop.f32.mrf.mxu3 }
 0x265   : > { %v703_v39 = vsel %vm702_vm8, %v696_v38, -inf }
 0x266   : > { %704 = vmax.xlane.f32.xlu2 %v703_v39 }
 0x26c   : > { %v699_v40 = vpop.f32.mrf.mxu3 }
 0x26d   : > { %v706_v41 = vsel %vm702_vm8, %v699_v40, -inf }
 0x26e   : > { %707 = vmax.xlane.f32.xlu2 %v706_v41 }
 0x286   : > { %788 = vrot.lane.b32.xlu2 %v640_v35, %s1967_s16 }
 0x28e   : > { %784 = vrot.lane.b32.xlu2 %v617_v21, %s1967_s16 }
 0x2d9   : > { %v705_v42 = vpop.xlane.xlu2 %704 }
 0x2da   : > { %v709_v43 = vsub.f32 %v696_v38, %v705_v42 }
 0x2dc   : > { %v711_v44 = vmul.f32 1.442695, %v709_v43 }
 0x2de   : > { %1659 = vpow2.f32 %v711_v44 }
 0x2e1   : > { %v708_v45 = vpop.xlane.xlu2 %707 }
 0x2e2   : > { %v710_v46 = vsub.f32 %v699_v40, %v708_v45 }
 0x2e4   : > { %v1660_v47 = vpop.eup %1659  ;;  %v713_v48 = vmul.f32 1.442695, %v710_v46 }
 0x2e5   : > { %v715_v49 = vsel %vm702_vm8, %v1660_v47, 0.0 }
 0x2e6   : > { %1661 = vpow2.f32 %v713_v48  ;;  %716 = vadd.xlane.f32.xlu0 %v715_v49 }
 0x2e9   : > { %v789_v50 = vpop.permute.xlu2 %788 }
 0x2ea   : > { %1506 = vmatpush.xpose.msk.msra.mxu3 %vm666_vm7, %v789_v50 }
 0x2ec   : > { %v1662_v51 = vpop.eup %1661 }
 0x2ed   : > { %v718_v52 = vsel %vm702_vm8, %v1662_v51, 0.0 }
 0x2ee   : > { %719 = vadd.xlane.f32.xlu1 %v718_v52 }
 0x2f1   : > { %v785_v19 = vpop.permute.xlu2 %784 }
 0x2fa   : > { %786 = vrot.lane.b32.xlu0 %v637_v33, %s1967_s16 }
 0x307   : > { %782 = vrot.lane.b32.xlu1 %v614_v36, %s1967_s16 }
 0x359   : > { %v717_v53 = vpop.xlane.xlu0 %716 }
 0x35a   : > { %1663 = vrcp.f32 %v717_v53  ;;  %v732_v58 = vand.u32 2147483648, %v717_v53  ;;  %v730_v60 = vand.u32 2147483647, %v717_v53  ;;  %vm726_vm10 = vweird.f32 %v717_v53 }
 0x35c   : > { %v733_v63 = vor.u32 1.1754944e-38, %v732_v58  ;;  %vm731_vm12 = vcmp.eq.f32.partialorder %v730_v60, 8.507059e+37 }
 0x360   : > { %v1664_v54 = vpop.eup %1663 }
 0x361   : > { %v722_v55 = vmul.f32 %v1664_v54, %v717_v53  ;;  %v720_v56 = vpop.xlane.xlu1 %719  ;;  %vm727_vm9 = vweird.f32 %v1664_v54 }
 0x362   : > { %1665 = vrcp.f32 %v720_v56  ;;  %vm728_vm11 = vmor %vm726_vm10, %vm727_vm9  ;;  %v747_v7 = vand.u32 2147483648, %v720_v56  ;;  %v745_v10 = vand.u32 2147483647, %v720_v56  ;;  %vm741_vm14 = vweird.f32 %v720_v56 }
 0x363   : > { %v723_v57 = vsub.f32 1.0, %v722_v55 }
 0x364   : > { %v748_v12 = vor.u32 1.1754944e-38, %v747_v7  ;;  %vm746_vm0 = vcmp.eq.f32.partialorder %v745_v10, 8.507059e+37  ;;  %v928_v7 = vld [vmem:[#allocation9 + $0x48] sm:$0xff]  ;;  %v925_v10 = vld [vmem:[#allocation9 + $0x30] sm:$0xff] }
 0x365   : > { %v724_v59 = vmul.f32 %v1664_v54, %v723_v57 }
 0x367   : > { %v725_v61 = vadd.f32 %v1664_v54, %v724_v59 }
 0x368   : > { %v1666_v62 = vpop.eup %1665 }
 0x369   : > { %v737_v2 = vmul.f32 %v1666_v62, %v720_v56  ;;  %v729_v3 = vsel %vm728_vm11, %v1664_v54, %v725_v61  ;;  %vm742_vm13 = vweird.f32 %v1666_v62 }
 0x36a   : > { %v734_v4 = vsel %vm731_vm12, %v733_v63, %v729_v3  ;;  %vm743_vm15 = vmor %vm741_vm14, %vm742_vm13  ;;  %v934_v63 = vld [vmem:[#allocation9 + $0x78] sm:$0xff]  ;;  %v932_v3 = vld [vmem:[#allocation9 + $0x68] sm:$0xff] }
 0x36b   : > { %v738_v5 = vsub.f32 1.0, %v737_v2  ;;  %v735_v6 = vmul.f32 %v1660_v47, %v734_v4  ;;  %v933_v2 = vld [vmem:[#allocation9 + $0x70] sm:$0xff]  ;;  %935 = vmatpush.msrb.mxu1 %v934_v63  ;;  %v931_v4 = vld [vmem:[#allocation9 + $0x60] sm:$0xff]  ;;  %v1015_v63 = vld [vmem:[#allocation11 + $0x18] sm:$0xff] }
 0x36c   : > { %v787_v8 = vpop.permute.xlu0 %786 }
 0x36d   : > { %v739_v9 = vmul.f32 %v1666_v62, %v738_v5  ;;  %1504 = vmatmul.msk.f32.vlgmr.msrb.gmra.mxu3 %vm702_vm8, %v735_v6  ;;  %936 = vmatpush.msrb.mxu1 %v933_v2  ;;  %v930_v5 = vld [vmem:[#allocation9 + $0x58] sm:$0xff]  ;;  %v929_v6 = vld [vmem:[#allocation9 + $0x50] sm:$0xff]  ;;  %v1012_v2 = vld [vmem:[#allocation11] sm:$0xff] }
 0x36e   : > { %1507 = vmatpush.xpose.msk.msra.mxu3 %vm666_vm7, %v787_v8  ;;  %v927_v8 = vld [vmem:[#allocation9 + $0x40] sm:$0xff] }
 0x36f   : > { %v740_v11 = vadd.f32 %v1666_v62, %v739_v9  ;;  %937 = vmatpush.msrb.mxu1 %v932_v3  ;;  %v926_v9 = vld [vmem:[#allocation9 + $0x38] sm:$0xff]  ;;  %v1013_v3 = vld [vmem:[#allocation11 + $0x8] sm:$0xff] }
 0x371   : > { %v744_v13 = vsel %vm743_vm15, %v1666_v62, %v740_v11  ;;  %938 = vmatpush.msrb.mxu1 %v931_v4  ;;  %v924_v11 = vld [vmem:[#allocation9 + $0x28] sm:$0xff] }
 0x372   : > { %v749_v15 = vsel %vm746_vm0, %v748_v12, %v744_v13  ;;  %v923_v12 = vld [vmem:[#allocation9 + $0x20] sm:$0xff] }
 0x373   : > { %v750_v16 = vmul.f32 %v1662_v51, %v749_v15  ;;  %939 = vmatpush.msrb.mxu1 %v930_v5 }
 0x375   : > { %1505 = vmatmul.msk.f32.gmra.mxu3 %vm702_vm8, %v750_v16  ;;  %940 = vmatpush.msrb.mxu1 %v929_v6  ;;  %v922_v16 = vld [vmem:[#allocation9 + $0x18] sm:$0xff] }
 0x377   : > { %941 = vmatpush.msrb.mxu1 %v928_v7 }
 0x379   : > { %v783_v18 = vpop.permute.xlu1 %782  ;;  %942 = vmatpush.msrb.mxu1 %v927_v8 }
 0x37b   : > { %943 = vmatpush.msrb.mxu1 %v926_v9 }
 0x37d   : > { %1508 = vmatmul.msk.f32.vlgmr.msra.gmra.mxu3 %vm666_vm7, %v783_v18  ;;  %944 = vmatpush.msrb.mxu1 %v925_v10  ;;  %v921_v18 = vld [vmem:[#allocation9 + $0x10] sm:$0xff] }
 0x37f   : > { %945 = vmatpush.msrb.mxu1 %v924_v11 }
 0x381   : > { %946 = vmatpush.msrb.mxu1 %v923_v12 }
 0x383   : > { %947 = vmatpush.msrb.mxu1 %v922_v16 }
 0x385   : > { %1509 = vmatmul.msk.f32.gmra.mxu3 %vm666_vm7, %v785_v19  ;;  %v920_v19 = vld [vmem:[#allocation9 + $0x8] sm:$0xff]  ;;  %948 = vmatpush.msrb.mxu1 %v921_v18 }
 0x387   : > { %949 = vmatpush.msrb.mxu1 %v920_v19 }
 0x3f0   : > { %v774_v20 = vpop.f32.mrf.mxu3 }
 0x3f1   : > { %780 = vst.msk [vmem:[#allocation2] sm:$0xff] %vm666_vm7, %v774_v20  ;;  %v919_v20 = vld [vmem:[#allocation9] sm:$0xff] }
 0x3f2   : > { %950 = vmatpush.msrb.mxu1 %v919_v20  ;;  %v1650_v20 = vld [vmem:[%s2418_s5] ss:$0 sm:$0xff] }
 0x3f8   : > { %v777_v22 = vpop.f32.mrf.mxu3 }
 0x3f9   : > { %781 = vst.msk [vmem:[#allocation2 + $0x8] sm:$0xff] %vm666_vm7, %v777_v22 }
 0x400   : > { %v815_v23 = vpop.f32.mrf.mxu3 }
 0x401   : > { %v821_v24 = vsel %vm702_vm8, %v815_v23, -inf }
 0x402   : > { %822 = vmax.xlane.f32.xlu0 %v821_v24 }
 0x408   : > { %v818_v25 = vpop.f32.mrf.mxu3 }
 0x409   : > { %v824_v26 = vsel %vm702_vm8, %v818_v25, -inf }
 0x40a   : > { %825 = vmax.xlane.f32.xlu2 %v824_v26 }
 0x422   : > { %1644 = vrot.lane.b32.xlu2 %v1643_v27, %s1967_s16 }
 0x475   : > { %v823_v28 = vpop.xlane.xlu0 %822 }
 0x476   : > { %v827_v29 = vsub.f32 %v815_v23, %v823_v28 }
 0x478   : > { %v829_v30 = vmul.f32 1.442695, %v827_v29 }
 0x47a   : > { %1667 = vpow2.f32 %v829_v30  ;;  %v1042_v30 = vld [vmem:[#allocation11 + $0xf0] sm:$0xff] }
 0x47b   : > { %1050 = vmatpush.msrb.mxu2 %v1042_v30 }
 0x47d   : > { %v826_v31 = vpop.xlane.xlu2 %825 }
 0x47e   : > { %v828_v32 = vsub.f32 %v818_v25, %v826_v31  ;;  %v1043_v31 = vld [vmem:[#allocation11 + $0xf8] sm:$0xff] }
 0x47f   : > { %1073 = vmatpush.msrb.mxu3 %v1043_v31 }
 0x480   : > { %v1668_v17 = vpop.eup %1667  ;;  %v831_v33 = vmul.f32 1.442695, %v828_v32  ;;  %v1040_v32 = vld [vmem:[#allocation11 + $0xe0] sm:$0xff] }
 0x481   : > { %v833_v35 = vsel %vm702_vm8, %v1668_v17, 0.0  ;;  %1051 = vmatpush.msrb.mxu2 %v1040_v32 }
 0x482   : > { %1669 = vpow2.f32 %v831_v33  ;;  %834 = vadd.xlane.f32.xlu1 %v833_v35 }
 0x485   : > { %v1645_v36 = vpop.permute.xlu2 %1644 }
 0x486   : > { %v1646_v21 = vunpack.i.l.bf16 %v1645_v36  ;;  %v1647_v39 = vunpack.i.h.bf16 %v1645_v36 }
 0x488   : > { %v1670_v38 = vpop.eup %1669  ;;  %897 = vmatpush.msrb.mxu0 %v1646_v21 }
 0x489   : > { %v836_v34 = vsel %vm702_vm8, %v1670_v38, 0.0 }
 0x48a   : > { %837 = vadd.xlane.f32.xlu0 %v836_v34  ;;  %898 = vmatpush.msrb.mxu0 %v1647_v39  ;;  %v1038_v34 = vld [vmem:[#allocation11 + $0xd0] sm:$0xff] }
 0x48b   : > { %1052 = vmatpush.msrb.mxu2 %v1038_v34  ;;  %v1270_v34 = vld [vmem:[#allocation12 + $0x70] sm:$0xff] }
 0x4f5   : > { %v835_v37 = vpop.xlane.xlu1 %834 }
 0x4f6   : > { %1671 = vrcp.f32 %v835_v37  ;;  %v850_v44 = vand.u32 2147483648, %v835_v37  ;;  %v848_v46 = vand.u32 2147483647, %v835_v37  ;;  %vm844_vm2 = vweird.f32 %v835_v37 }
 0x4f8   : > { %v851_v49 = vor.u32 1.1754944e-38, %v850_v44  ;;  %vm849_vm4 = vcmp.eq.f32.partialorder %v848_v46, 8.507059e+37  ;;  %v1032_v44 = vld [vmem:[#allocation11 + $0xa0] sm:$0xff]  ;;  %v1030_v46 = vld [vmem:[#allocation11 + $0x90] sm:$0xff] }
 0x4fc   : > { %v1672_v40 = vpop.eup %1671 }
 0x4fd   : > { %v840_v41 = vmul.f32 %v1672_v40, %v835_v37  ;;  %v838_v42 = vpop.xlane.xlu0 %837  ;;  %vm845_vm1 = vweird.f32 %v1672_v40  ;;  %v1039_v37 = vld [vmem:[#allocation11 + $0xd8] sm:$0xff] }
 0x4fe   : > { %1673 = vrcp.f32 %v838_v42  ;;  %vm846_vm3 = vmor %vm844_vm2, %vm845_vm1  ;;  %v865_v55 = vand.u32 2147483648, %v838_v42  ;;  %v863_v57 = vand.u32 2147483647, %v838_v42  ;;  %vm859_vm6 = vweird.f32 %v838_v42 }
 0x4ff   : > { %v841_v43 = vsub.f32 1.0, %v840_v41  ;;  %v1037_v41 = vld [vmem:[#allocation11 + $0xc8] sm:$0xff] }
 0x500   : > { %v866_v59 = vor.u32 1.1754944e-38, %v865_v55  ;;  %vm864_vm9 = vcmp.eq.f32.partialorder %v863_v57, 8.507059e+37  ;;  %v1023_v55 = vld [vmem:[#allocation11 + $0x58] sm:$0xff]  ;;  %v1021_v57 = vld [vmem:[#allocation11 + $0x48] sm:$0xff] }
 0x501   : > { %v842_v45 = vmul.f32 %v1672_v40, %v841_v43  ;;  %v1035_v43 = vld [vmem:[#allocation11 + $0xb8] sm:$0xff] }
 0x503   : > { %v843_v47 = vadd.f32 %v1672_v40, %v842_v45  ;;  %v1033_v45 = vld [vmem:[#allocation11 + $0xa8] sm:$0xff] }
 0x504   : > { %v1674_v48 = vpop.eup %1673 }
 0x505   : > { %v855_v50 = vmul.f32 %v1674_v48, %v838_v42  ;;  %v847_v51 = vsel %vm846_vm3, %v1672_v40, %v843_v47  ;;  %vm860_vm5 = vweird.f32 %v1674_v48  ;;  %v1036_v40 = vld [vmem:[#allocation11 + $0xc0] sm:$0xff]  ;;  %v1034_v42 = vld [vmem:[#allocation11 + $0xb0] sm:$0xff]  ;;  %v1031_v47 = vld [vmem:[#allocation11 + $0x98] sm:$0xff] }
 0x506   : > { %v852_v52 = vsel %vm849_vm4, %v851_v49, %v847_v51  ;;  %vm861_vm7 = vmor %vm859_vm6, %vm860_vm5  ;;  %1053 = vmatpush.msrb.mxu2 %v1036_v40  ;;  %v1029_v49 = vld [vmem:[#allocation11 + $0x88] sm:$0xff]  ;;  %v1027_v51 = vld [vmem:[#allocation11 + $0x78] sm:$0xff] }
 0x507   : > { %v856_v53 = vsub.f32 1.0, %v855_v50  ;;  %v853_v54 = vmul.f32 %v1668_v17, %v852_v52  ;;  %v1041_v17 = vld [vmem:[#allocation11 + $0xe8] sm:$0xff]  ;;  %v1026_v50 = vld [vmem:[#allocation11 + $0x70] sm:$0xff]  ;;  %v1024_v52 = vld [vmem:[#allocation11 + $0x60] sm:$0xff] }
 0x508   : > { %1074 = vmatpush.msrb.mxu3 %v1041_v17  ;;  %1054 = vmatpush.msrb.mxu2 %v1034_v42 }
 0x509   : > { %v857_v56 = vmul.f32 %v1674_v48, %v856_v53  ;;  %1510 = vmatmul.msk.f32.vlgmr.msrb.gmra.mxu0 %vm702_vm8, %v853_v54  ;;  %v1025_v53 = vld [vmem:[#allocation11 + $0x68] sm:$0xff]  ;;  %v1022_v54 = vld [vmem:[#allocation11 + $0x50] sm:$0xff] }
 0x50a   : > { %1075 = vmatpush.msrb.mxu3 %v1039_v37  ;;  %1055 = vmatpush.msrb.mxu2 %v1032_v44  ;;  %v1286_v37 = vld [vmem:[#allocation12 + $0xf0] sm:$0xff]  ;;  %v1285_v44 = vld [vmem:[#allocation12 + $0xe8] sm:$0xff] }
 0x50b   : > { %v858_v58 = vadd.f32 %v1674_v48, %v857_v56  ;;  %v1020_v56 = vld [vmem:[#allocation11 + $0x40] sm:$0xff] }
 0x50c   : > { %1076 = vmatpush.msrb.mxu3 %v1037_v41  ;;  %1056 = vmatpush.msrb.mxu2 %v1030_v46 }
 0x50d   : > { %v862_v60 = vsel %vm861_vm7, %v1674_v48, %v858_v58  ;;  %v1028_v48 = vld [vmem:[#allocation11 + $0x80] sm:$0xff]  ;;  %v1018_v58 = vld [vmem:[#allocation11 + $0x30] sm:$0xff] }
 0x50e   : > { %v867_v61 = vsel %vm864_vm9, %v866_v59, %v862_v60  ;;  %1077 = vmatpush.msrb.mxu3 %v1035_v43  ;;  %1057 = vmatpush.msrb.mxu2 %v1028_v48  ;;  %v1019_v59 = vld [vmem:[#allocation11 + $0x38] sm:$0xff]  ;;  %v1016_v60 = vld [vmem:[#allocation11 + $0x20] sm:$0xff]  ;;  %v1269_v43 = vld [vmem:[#allocation12 + $0x68] sm:$0xff] }
 0x50f   : > { %v868_v62 = vmul.f32 %v1670_v38, %v867_v61  ;;  %v1017_v61 = vld [vmem:[#allocation11 + $0x28] sm:$0xff]  ;;  %v1284_v48 = vld [vmem:[#allocation12 + $0xe0] sm:$0xff] }
 0x510   : > { %1078 = vmatpush.msrb.mxu3 %v1033_v45  ;;  %1058 = vmatpush.msrb.mxu2 %v1026_v50 }
 0x511   : > { %1511 = vmatmul.msk.f32.gmra.mxu0 %vm702_vm8, %v868_v62  ;;  %vm914_vm8 = vcmask 1048064   ;;  %v1014_v62 = vld [vmem:[#allocation11 + $0x10] sm:$0xff] }
 0x512   : > { %1079 = vmatpush.msrb.mxu3 %v1031_v47  ;;  %1059 = vmatpush.msrb.mxu2 %v1024_v52  ;;  %v1268_v47 = vld [vmem:[#allocation12 + $0x60] sm:$0xff]  ;;  %v1283_v52 = vld [vmem:[#allocation12 + $0xd8] sm:$0xff] }
 0x514   : > { %1080 = vmatpush.msrb.mxu3 %v1029_v49  ;;  %1060 = vmatpush.msrb.mxu2 %v1022_v54 }
 0x516   : > { %1081 = vmatpush.msrb.mxu3 %v1027_v51  ;;  %1061 = vmatpush.msrb.mxu2 %v1020_v56  ;;  %v1267_v51 = vld [vmem:[#allocation12 + $0x58] sm:$0xff] }
 0x518   : > { %1082 = vmatpush.msrb.mxu3 %v1025_v53  ;;  %1062 = vmatpush.msrb.mxu2 %v1018_v58  ;;  %v1282_v58 = vld [vmem:[#allocation12 + $0xd0] sm:$0xff] }
 0x51a   : > { %1083 = vmatpush.msrb.mxu3 %v1023_v55  ;;  %1063 = vmatpush.msrb.mxu2 %v1016_v60 }
 0x51c   : > { %1084 = vmatpush.msrb.mxu3 %v1021_v57  ;;  %1064 = vmatpush.msrb.mxu2 %v1014_v62  ;;  %v1266_v57 = vld [vmem:[#allocation12 + $0x50] sm:$0xff]  ;;  %v1281_v62 = vld [vmem:[#allocation12 + $0xc8] sm:$0xff] }
 0x51e   : > { %1085 = vmatpush.msrb.mxu3 %v1019_v59  ;;  %1065 = vmatpush.msrb.mxu2 %v1012_v2 }
 0x520   : > { %1086 = vmatpush.msrb.mxu3 %v1017_v61  ;;  %v1265_v61 = vld [vmem:[#allocation12 + $0x48] sm:$0xff] }
 0x522   : > { %1087 = vmatpush.msrb.mxu3 %v1015_v63 }
 0x524   : > { %1088 = vmatpush.msrb.mxu3 %v1013_v3  ;;  %v1264_v3 = vld [vmem:[#allocation12 + $0x40] sm:$0xff] }
 0x586   : > { %v900_v13 = vpop.f32.mrf.mxu0 }
 0x587   : > { %908 = vrot.lane.b32.xlu1 %v900_v13, %s1967_s16 }
 0x58e   : > { %v903_v15 = vpop.f32.mrf.mxu0 }
 0x58f   : > { %910 = vrot.lane.b32.xlu0 %v903_v15, %s1967_s16  ;;  %s1356_s16 = scalar_lea.hbm %s2424_s11, %s1518_s26 }
 0x590   : > { %s1359_s30 = sshll.u32 %s1356_s16, 4  ;;  %s1360_s30 = int_to_ptr.hbm [resolvable:$true] %s1359_s30 }
 0x591   : > { %s1889_s7 = sshra.s32 %s1360_s30, 4  ;;  %s1890_s7 = int_to_ptr.hbm [resolvable:$true] %s1889_s7 }
 0x592   : > { %s1891_s24 = scalar_lea.hbm %s1890_s7, 16  ;;  %p1896_p12 = scmp.lt.s32.totalorder %s1890_s7, %s2424_s11 }
 0x593   : > { %p1892_p1 = scmp.ne.s32.totalorder %s1890_s7, %s1891_s24  ;;  %p1897_p8 = scmp.lt.s32.totalorder %s1895_s29, %s1891_s24 }
 0x595   : > { %p1893_p3 = pnand %p1892_p1, %p2123_p13  ;;  %p1898_p7 = por %p1897_p8, %p1896_p12 }
 0x597   : > { %p1894_p4 = pneg %p1893_p3 }
 0x599   : > { %p1899_p9 = pnand %p1898_p7, %p1894_p4 }
 0x5f9   : > { %v909_v22 = vpop.permute.xlu1 %908 }
 0x5fa   : > { %915 = vst.msk [vmem:[#allocation2] sm:$0xff] %vm914_vm8, %v909_v22 }
 0x601   : > { %v911_v23 = vpop.permute.xlu0 %910  ;;  %v917_v24 = vld [vmem:[#allocation2] sm:$0xff] }
 0x602   : > { %916 = vst.msk [vmem:[#allocation2 + $0x8] sm:$0xff] %vm914_vm8, %v911_v23  ;;  %951 = vmatmul.f32.vlgmr.msrb.gmra.mxu1 %v917_v24  ;;  %v1651_v24 = vld [vmem:[%s2419_s6] ss:$0 sm:$0xff] }
 0x609   : > { %v918_v25 = vld [vmem:[#allocation2 + $0x8] sm:$0xff] }
 0x60a   : > { %954 = vmatmul.f32.gmra.mxu1 %v918_v25 }
 0x67f   : > { %v952_v26 = vpop.f32.mrf.mxu1 }
 0x680   : > { %v2244_v27 = vadd.f32 %v952_v26, %v2179_v0 }
 0x682   : > { %962 = vadd.xlane.f32.xlu2 %v2244_v27 }
 0x687   : > { %v955_v28 = vpop.f32.mrf.mxu1 }
 0x688   : > { %v2248_v29 = vadd.f32 %v955_v28, %v2182_v1 }
 0x68a   : > { %964 = vadd.xlane.f32.xlu0 %v2248_v29 }
 0x6f5   : > { %v963_v33 = vpop.xlane.xlu2 %962 }
 0x6f6   : > { %v966_v0 = vmul.f32 %v963_v33, %v2185_v14 }
 0x6f8   : > { %v2253_v35 = vsub.f32 %v2244_v27, %v966_v0 }
 0x6fa   : > { %v970_v1 = vmul.f32 %v2253_v35, %v2253_v35 }
 0x6fc   : > { %972 = vadd.xlane.f32.xlu1 %v970_v1 }
 0x6fd   : > { %v965_v36 = vpop.xlane.xlu0 %964 }
 0x6fe   : > { %v967_v21 = vmul.f32 %v965_v36, %v2185_v14 }
 0x700   : > { %v2259_v38 = vsub.f32 %v2248_v29, %v967_v21  ;;  %v1271_v21 = vld [vmem:[#allocation12 + $0x78] sm:$0xff] }
 0x701   : > { %1288 = vmatpush.msra.mxu0 %v1271_v21 }
 0x702   : > { %v971_v39 = vmul.f32 %v2259_v38, %v2259_v38 }
 0x703   : > { %1289 = vmatpush.msra.mxu0 %v1270_v34 }
 0x704   : > { %974 = vadd.xlane.f32.xlu2 %v971_v39  ;;  %v1287_v39 = vld [vmem:[#allocation12 + $0xf8] sm:$0xff] }
 0x705   : > { %1311 = vmatpush.msra.mxu1 %v1287_v39  ;;  %1519 = vmatpush.msra.mxu2 %v1287_v39 }
 0x706   : > { %1290 = vmatpush.msra.mxu0 %v1269_v43 }
 0x707   : > { %1312 = vmatpush.msra.mxu1 %v1286_v37  ;;  %1520 = vmatpush.msra.mxu2 %v1286_v37  ;;  %v1258_v37 = vld [vmem:[#allocation12 + $0x10] sm:$0xff] }
 0x708   : > { %1291 = vmatpush.msra.mxu0 %v1268_v47  ;;  %v1257_v47 = vld [vmem:[#allocation12 + $0x8] sm:$0xff] }
 0x709   : > { %1313 = vmatpush.msra.mxu1 %v1285_v44  ;;  %1521 = vmatpush.msra.mxu2 %v1285_v44 }
 0x70a   : > { %1292 = vmatpush.msra.mxu0 %v1267_v51 }
 0x70b   : > { %1314 = vmatpush.msra.mxu1 %v1284_v48  ;;  %1522 = vmatpush.msra.mxu2 %v1284_v48  ;;  %v1273_v48 = vld [vmem:[#allocation12 + $0x88] sm:$0xff] }
 0x70c   : > { %1293 = vmatpush.msra.mxu0 %v1266_v57  ;;  %v1272_v57 = vld [vmem:[#allocation12 + $0x80] sm:$0xff] }
 0x70d   : > { %1315 = vmatpush.msra.mxu1 %v1283_v52  ;;  %1523 = vmatpush.msra.mxu2 %v1283_v52 }
 0x70e   : > { %1294 = vmatpush.msra.mxu0 %v1265_v61 }
 0x70f   : > { %1316 = vmatpush.msra.mxu1 %v1282_v58  ;;  %1524 = vmatpush.msra.mxu2 %v1282_v58 }
 0x710   : > { %1295 = vmatpush.msra.mxu0 %v1264_v3 }
 0x711   : > { %1317 = vmatpush.msra.mxu1 %v1281_v62  ;;  %1525 = vmatpush.msra.mxu2 %v1281_v62 }
 0x76f   : > { %v973_v4 = vpop.xlane.xlu1 %972 }
 0x770   : > { %v976_v5 = vmul.f32 %v973_v4, %v2185_v14  ;;  %v1280_v4 = vld [vmem:[#allocation12 + $0xc0] sm:$0xff] }
 0x771   : > { %1318 = vmatpush.msra.mxu1 %v1280_v4  ;;  %1526 = vmatpush.msra.mxu2 %v1280_v4 }
 0x772   : > { %v978_v6 = vadd.f32 1e-05, %v976_v5  ;;  %v1263_v5 = vld [vmem:[#allocation12 + $0x38] sm:$0xff] }
 0x773   : > { %1296 = vmatpush.msra.mxu0 %v1263_v5 }
 0x774   : > { %1675 = vrsqrt.f32 %v978_v6  ;;  %vm986_vm11 = vweird.f32 %v978_v6 }
 0x777   : > { %v975_v7 = vpop.xlane.xlu2 %974 }
 0x778   : > { %v977_v8 = vmul.f32 %v975_v7, %v2185_v14  ;;  %v1279_v7 = vld [vmem:[#allocation12 + $0xb8] sm:$0xff] }
 0x779   : > { %1319 = vmatpush.msra.mxu1 %v1279_v7  ;;  %1527 = vmatpush.msra.mxu2 %v1279_v7 }
 0x77a   : > { %v1676_v9 = vpop.eup %1675  ;;  %v979_v10 = vadd.f32 1e-05, %v977_v8 }
 0x77b   : > { %v981_v11 = vmul.f32 %v1676_v9, %v978_v6  ;;  %vm987_vm10 = vweird.f32 %v1676_v9 }
 0x77c   : > { %1677 = vrsqrt.f32 %v979_v10  ;;  %vm988_vm12 = vmor %vm986_vm11, %vm987_vm10  ;;  %vm996_vm14 = vweird.f32 %v979_v10 }
 0x77d   : > { %v982_v12 = vmul.f32 %v1676_v9, %v981_v11 }
 0x77f   : > { %v983_v13 = vmul.f32 0.5, %v982_v12 }
 0x781   : > { %v984_v15 = vsub.f32 1.5, %v983_v13 }
 0x782   : > { %v1678_v16 = vpop.eup %1677 }
 0x783   : > { %v985_v18 = vmul.f32 %v1676_v9, %v984_v15  ;;  %v991_v19 = vmul.f32 %v1678_v16, %v979_v10  ;;  %vm997_vm13 = vweird.f32 %v1678_v16  ;;  %v1278_v10 = vld [vmem:[#allocation12 + $0xb0] sm:$0xff] }
 0x784   : > { %vm998_vm15 = vmor %vm996_vm14, %vm997_vm13  ;;  %1320 = vmatpush.msra.mxu1 %v1278_v10  ;;  %1528 = vmatpush.msra.mxu2 %v1278_v10 }
 0x785   : > { %v989_v22 = vsel %vm988_vm12, %v1676_v9, %v985_v18  ;;  %v992_v23 = vmul.f32 %v1678_v16, %v991_v19  ;;  %v1262_v9 = vld [vmem:[#allocation12 + $0x30] sm:$0xff]  ;;  %v1277_v18 = vld [vmem:[#allocation12 + $0xa8] sm:$0xff] }
 0x786   : > { %v1000_v14 = vmul.f32 %v989_v22, %v2253_v35  ;;  %v1044_v35 = vld [vmem:[%s2421_s8] sm:$0x3]  ;;  %1297 = vmatpush.msra.mxu0 %v1262_v9  ;;  %1321 = vmatpush.msra.mxu1 %v1277_v18 }
 0x787   : > { %v993_v25 = vmul.f32 0.5, %v992_v23  ;;  %v1046_v1 = vperm.slane %v1044_v35, 0  ;;  %v1047_v36 = vperm.slane %v1044_v35, 1  ;;  %1529 = vmatpush.msra.mxu2 %v1277_v18  ;;  %v1259_v35 = vld [vmem:[#allocation12 + $0x18] sm:$0xff] }
 0x788   : > { %v1005_v26 = vmul.f32 %v1650_v20, %v1000_v14 }
 0x789   : > { %v994_v28 = vsub.f32 1.5, %v993_v25  ;;  %v1276_v25 = vld [vmem:[#allocation12 + $0xa0] sm:$0xff] }
 0x78a   : > { %v1010_v30 = vadd.f32 %v1651_v24, %v1005_v26  ;;  %1322 = vmatpush.msra.mxu1 %v1276_v25  ;;  %1530 = vmatpush.msra.mxu2 %v1276_v25 }
 0x78b   : > { %v995_v31 = vmul.f32 %v1678_v16, %v994_v28 }
 0x78c   : > { %1066 = vmatmul.f32.vlgmr.msrb.gmra.mxu2 %v1010_v30  ;;  %1089 = vmatmul.f32.vlgmr.msrb.gmra.mxu3 %v1010_v30 }
 0x78d   : > { %v999_v32 = vsel %vm998_vm15, %v1678_v16, %v995_v31  ;;  %v1261_v16 = vld [vmem:[#allocation12 + $0x28] sm:$0xff] }
 0x78e   : > { %v1001_v17 = vmul.f32 %v999_v32, %v2259_v38  ;;  %1298 = vmatpush.msra.mxu0 %v1261_v16 }
 0x790   : > { %v1006_v33 = vmul.f32 %v1650_v20, %v1001_v17 }
 0x792   : > { %v1011_v0 = vadd.f32 %v1651_v24, %v1006_v33  ;;  %v1260_v24 = vld [vmem:[#allocation12 + $0x20] sm:$0xff] }
 0x793   : > { %1299 = vmatpush.msra.mxu0 %v1260_v24 }
 0x794   : > { %1069 = vmatmul.f32.gmra.mxu2 %v1011_v0  ;;  %1092 = vmatmul.f32.gmra.mxu3 %v1011_v0 }
 0x795   : > { %1300 = vmatpush.msra.mxu0 %v1259_v35 }
 0x797   : > { %1301 = vmatpush.msra.mxu0 %v1258_v37 }
 0x799   : > { %1302 = vmatpush.msra.mxu0 %v1257_v47 }
 0x80f   : > { %v1067_v40 = vpop.f32.mrf.mxu2  ;;  %v1090_v41 = vpop.f32.mrf.mxu3 }
 0x810   : > { %v2276_v38 = vadd.f32 %v1067_v40, %v1046_v1  ;;  %v2278_v42 = vadd.f32 %v1090_v41, %v1047_v36  ;;  %v1274_v40 = vld [vmem:[#allocation12 + $0x90] sm:$0xff] }
 0x812   : > { %v2281_v45 = vmul.f32 0.70710677, %v2276_v38  ;;  %v2284_v46 = vmul.f32 0.70710677, %v2278_v42 }
 0x814   : > { %v2287_v49 = vand.u32 2147483647, %v2281_v45  ;;  %v2290_v50 = vand.u32 2147483647, %v2284_v46 }
 0x816   : > { %v1112_v53 = vmul.f32 0.3275911, %v2287_v49  ;;  %v1113_v54 = vmul.f32 0.3275911, %v2290_v50  ;;  %v1216_v13 = vsub.f32 0.0, %v2287_v49  ;;  %v1217_v30 = vsub.f32 0.0, %v2290_v50 }
 0x817   : > { %v1070_v55 = vpop.f32.mrf.mxu2  ;;  %v1093_v56 = vpop.f32.mrf.mxu3 }
 0x818   : > { %v2294_v59 = vadd.f32 1.0, %v1112_v53  ;;  %v2296_v60 = vadd.f32 1.0, %v1113_v54  ;;  %v2298_v63 = vadd.f32 %v1070_v55, %v1046_v1  ;;  %v2301_v2 = vadd.f32 %v1093_v56, %v1047_v36  ;;  %v1275_v1 = vld [vmem:[#allocation12 + $0x98] sm:$0xff]  ;;  %v1256_v56 = vld [vmem:[#allocation12] sm:$0xff] }
 0x819   : > { %v1220_v17 = vmul.f32 %v1216_v13, %v2287_v49  ;;  %1323 = vmatpush.msra.mxu1 %v1275_v1  ;;  %1531 = vmatpush.msra.mxu2 %v1275_v1  ;;  %v1221_v52 = vmul.f32 %v1217_v30, %v2290_v50 }
 0x81a   : > { %1679 = vrcp.f32 %v2294_v59  ;;  %v2305_v6 = vmul.f32 0.70710677, %v2298_v63  ;;  %v2308_v8 = vmul.f32 0.70710677, %v2301_v2  ;;  %v1129_v28 = vand.u32 2147483647, %v2294_v59  ;;  %1303 = vmatpush.msra.mxu0 %v1256_v56 }
 0x81b   : > { %1681 = vrcp.f32 %v2296_v60  ;;  %v1131_v32 = vand.u32 2147483648, %v2294_v59  ;;  %v1146_v21 = vand.u32 2147483648, %v2296_v60  ;;  %v1144_v34 = vand.u32 2147483647, %v2296_v60  ;;  %1324 = vmatpush.msra.mxu1 %v1274_v40  ;;  %1532 = vmatpush.msra.mxu2 %v1274_v40 }
 0x81c   : > { %v2311_v11 = vand.u32 2147483647, %v2305_v6  ;;  %v2315_v15 = vand.u32 2147483647, %v2308_v8  ;;  %vm1125_vm2 = vweird.f32 %v2294_v59  ;;  %vm1140_vm4 = vweird.f32 %v2296_v60 }
 0x81d   : > { %v1132_v43 = vor.u32 1.1754944e-38, %v1131_v32  ;;  %vm1130_vm5 = vcmp.eq.f32.partialorder %v1129_v28, 8.507059e+37  ;;  %v1147_v51 = vor.u32 1.1754944e-38, %v1146_v21  ;;  %v1224_v54 = vmul.f32 1.442695, %v1220_v17  ;;  %1325 = vmatpush.msra.mxu1 %v1273_v48  ;;  %1533 = vmatpush.msra.mxu2 %v1273_v48 }
 0x81e   : > { %v1114_v22 = vmul.f32 0.3275911, %v2311_v11  ;;  %v1115_v14 = vmul.f32 0.3275911, %v2315_v15  ;;  %vm1145_vm7 = vcmp.eq.f32.partialorder %v1144_v34, 8.507059e+37  ;;  %v1218_v25 = vsub.f32 0.0, %v2311_v11 }
 0x81f   : > { %1326 = vmatpush.msra.mxu1 %v1272_v57  ;;  %1534 = vmatpush.msra.mxu2 %v1272_v57  ;;  %v1226_v7 = vmul.f32 1.442695, %v1221_v52 }
 0x820   : > { %v1680_v12 = vpop.eup %1679  ;;  %v2326_v31 = vadd.f32 1.0, %v1114_v22  ;;  %v2330_v0 = vadd.f32 1.0, %v1115_v14  ;;  %v1222_v48 = vmul.f32 %v1218_v25, %v2311_v11 }
 0x821   : > { %v2317_v19 = vpop.eup %1681  ;;  %v1121_v20 = vmul.f32 %v1680_v12, %v2294_v59  ;;  %vm1126_vm0 = vweird.f32 %v1680_v12 }
 0x822   : > { %v1136_v23 = vmul.f32 %v2317_v19, %v2296_v60  ;;  %1683 = vrcp.f32 %v2326_v31  ;;  %vm1141_vm1 = vweird.f32 %v2317_v19  ;;  %vm1127_vm3 = vmor %vm1125_vm2, %vm1126_vm0  ;;  %v1176_v13 = vand.u32 2147483648, %v2330_v0 }
 0x823   : > { %v1122_v26 = vsub.f32 1.0, %v1121_v20  ;;  %1685 = vrcp.f32 %v2330_v0  ;;  %vm1142_vm6 = vmor %vm1140_vm4, %vm1141_vm1  ;;  %v1161_v16 = vand.u32 2147483648, %v2326_v31  ;;  %v1159_v20 = vand.u32 2147483647, %v2326_v31 }
 0x824   : > { %v1137_v33 = vsub.f32 1.0, %v1136_v23  ;;  %1687 = vpow2.f32 %v1224_v54  ;;  %v1174_v14 = vand.u32 2147483647, %v2330_v0  ;;  %vm1155_vm10 = vweird.f32 %v2326_v31 }
 0x825   : > { %v1123_v36 = vmul.f32 %v1680_v12, %v1122_v26  ;;  %vm1170_vm11 = vweird.f32 %v2330_v0  ;;  %v1162_v32 = vor.u32 1.1754944e-38, %v1161_v16  ;;  %v1177_v35 = vor.u32 1.1754944e-38, %v1176_v13 }
 0x826   : > { %v1138_v39 = vmul.f32 %v2317_v19, %v1137_v33  ;;  %vm1160_vm14 = vcmp.eq.f32.partialorder %v1159_v20, 8.507059e+37  ;;  %vm1175_vm15 = vcmp.eq.f32.partialorder %v1174_v14, 8.507059e+37  ;;  %1689 = vpow2.f32 %v1226_v7 }
 0x827   : > { %v1124_v41 = vadd.f32 %v1680_v12, %v1123_v36  ;;  %vm1100_vm0 = vcmp.ge.f32.partialorder %v2281_v45, 0.0  ;;  %vm1101_vm1 = vcmp.ge.f32.partialorder %v2284_v46, 0.0  ;;  %v1245_v20 = vmul.f32 0.5, %v2278_v42 }
 0x828   : > { %v1139_v44 = vadd.f32 %v2317_v19, %v1138_v39  ;;  %v1684_v58 = vpop.eup %1683  ;;  %vm1102_vm2 = vcmp.ge.f32.partialorder %v2305_v6, 0.0 }
 0x829   : > { %v1128_v49 = vsel %vm1127_vm3, %v1680_v12, %v1124_v41  ;;  %v1686_v61 = vpop.eup %1685  ;;  %v1151_v50 = vmul.f32 %v1684_v58, %v2326_v31  ;;  %vm1156_vm9 = vweird.f32 %v1684_v58  ;;  %v1219_v31 = vsub.f32 0.0, %v2315_v15 }
 0x82a   : > { %v2345_v53 = vsel %vm1130_vm5, %v1132_v43, %v1128_v49  ;;  %v1143_v55 = vsel %vm1142_vm6, %v2317_v19, %v1139_v44  ;;  %v1166_v4 = vmul.f32 %v1686_v61, %v2330_v0  ;;  %vm1171_vm8 = vweird.f32 %v1686_v61  ;;  %vm1157_vm12 = vmor %vm1155_vm10, %vm1156_vm9  ;;  %v1688_v17 = vpop.eup %1687 }
 0x82b   : > { %v1180_v59 = vmul.f32 1.0614054, %v2345_v53  ;;  %v1148_v60 = vsel %vm1145_vm7, %v1147_v51, %v1143_v55  ;;  %v1152_v9 = vsub.f32 1.0, %v1151_v50  ;;  %vm1172_vm13 = vmor %vm1170_vm11, %vm1171_vm8  ;;  %v1223_v52 = vmul.f32 %v1219_v31, %v2315_v15 }
 0x82c   : > { %v1181_v62 = vmul.f32 1.0614054, %v1148_v60  ;;  %v1167_v12 = vsub.f32 1.0, %v1166_v4  ;;  %v1968_v15 = vmov -1.0   ;;  %vm1103_vm3 = vcmp.ge.f32.partialorder %v2308_v8, 0.0 }
 0x82d   : > { %v1184_v3 = vadd.f32 -1.4531521, %v1180_v59  ;;  %v1153_v19 = vmul.f32 %v1684_v58, %v1152_v9  ;;  %v1690_v59 = vpop.eup %1689  ;;  %v1230_v11 = vmul.f32 1.442695, %v1223_v52  ;;  %v1104_v9 = vsel %vm1100_vm0, 1.0, %v1968_v15 }
 0x82e   : > { %v1185_v5 = vadd.f32 -1.4531521, %v1181_v62  ;;  %v1168_v23 = vmul.f32 %v1686_v61, %v1167_v12  ;;  %v1228_v62 = vmul.f32 1.442695, %v1222_v48  ;;  %v1106_v42 = vsel %vm1102_vm2, 1.0, %v1968_v15 }
 0x82f   : > { %v1188_v10 = vmul.f32 %v1184_v3, %v2345_v53  ;;  %v1154_v26 = vadd.f32 %v1684_v58, %v1153_v19 }
 0x830   : > { %v1189_v18 = vmul.f32 %v1185_v5, %v1148_v60  ;;  %v1169_v30 = vadd.f32 %v1686_v61, %v1168_v23  ;;  %1691 = vpow2.f32 %v1228_v62 }
 0x831   : > { %v1192_v22 = vadd.f32 1.4214138, %v1188_v10  ;;  %v1158_v1 = vsel %vm1157_vm12, %v1684_v58, %v1154_v26  ;;  %1693 = vpow2.f32 %v1230_v11 }
 0x832   : > { %v1193_v24 = vadd.f32 1.4214138, %v1189_v18  ;;  %v1173_v21 = vsel %vm1172_vm13, %v1686_v61, %v1169_v30  ;;  %v1163_v39 = vsel %vm1160_vm14, %v1162_v32, %v1158_v1  ;;  %v1244_v18 = vmul.f32 0.5, %v2276_v38 }
 0x833   : > { %v1196_v28 = vmul.f32 %v1192_v22, %v2345_v53  ;;  %v1178_v37 = vsel %vm1175_vm15, %v1177_v35, %v1173_v21  ;;  %v1182_v40 = vmul.f32 1.0614054, %v1163_v39  ;;  %v1107_v1 = vsel %vm1103_vm3, 1.0, %v1968_v15 }
 0x834   : > { %v1197_v33 = vmul.f32 %v1193_v24, %v1148_v60  ;;  %v1183_v0 = vmul.f32 1.0614054, %v1178_v37 }
 0x835   : > { %v1200_v36 = vadd.f32 -0.28449672, %v1196_v28  ;;  %v1186_v44 = vadd.f32 -1.4531521, %v1182_v40 }
 0x836   : > { %v1201_v34 = vadd.f32 -0.28449672, %v1197_v33  ;;  %v1187_v49 = vadd.f32 -1.4531521, %v1183_v0  ;;  %v1692_v28 = vpop.eup %1691 }
 0x837   : > { %v1204_v41 = vmul.f32 %v1200_v36, %v2345_v53  ;;  %v1190_v54 = vmul.f32 %v1186_v44, %v1163_v39  ;;  %v1694_v32 = vpop.eup %1693 }
 0x838   : > { %v1205_v43 = vmul.f32 %v1201_v34, %v1148_v60  ;;  %v1191_v56 = vmul.f32 %v1187_v49, %v1178_v37 }
 0x839   : > { %v1208_v47 = vadd.f32 0.2548296, %v1204_v41  ;;  %v1194_v58 = vadd.f32 1.4214138, %v1190_v54 }
 0x83a   : > { %v1209_v51 = vadd.f32 0.2548296, %v1205_v43  ;;  %v1195_v50 = vadd.f32 1.4214138, %v1191_v56  ;;  %v1652_v43 = vld [vmem:[%s2423_s10] ss:$0 sm:$0xff] }
 0x83b   : > { %v1212_v55 = vmul.f32 %v1208_v47, %v2345_v53  ;;  %v1198_v4 = vmul.f32 %v1194_v58, %v1163_v39 }
 0x83c   : > { %v1213_v57 = vmul.f32 %v1209_v51, %v1148_v60  ;;  %v1199_v7 = vmul.f32 %v1195_v50, %v1178_v37  ;;  %v1105_v60 = vsel %vm1101_vm1, 1.0, %v1968_v15 }
 0x83d   : > { %v1232_v61 = vmul.f32 %v1688_v17, %v1212_v55  ;;  %v1202_v53 = vadd.f32 -0.28449672, %v1198_v4 }
 0x83e   : > { %v1233_v3 = vmul.f32 %v1690_v59, %v1213_v57  ;;  %v1203_v13 = vadd.f32 -0.28449672, %v1199_v7 }
 0x83f   : > { %v1236_v5 = vsub.f32 1.0, %v1232_v61  ;;  %v1206_v45 = vmul.f32 %v1202_v53, %v1163_v39 }
 0x840   : > { %v1237_v10 = vsub.f32 1.0, %v1233_v3  ;;  %v1207_v46 = vmul.f32 %v1203_v13, %v1178_v37 }
 0x841   : > { %v1240_v12 = vmul.f32 %v1236_v5, %v1104_v9  ;;  %v1210_v23 = vadd.f32 0.2548296, %v1206_v45 }
 0x842   : > { %v1241_v16 = vmul.f32 %v1237_v10, %v1105_v60  ;;  %v1211_v24 = vadd.f32 0.2548296, %v1207_v46 }
 0x843   : > { %v1248_v19 = vadd.f32 1.0, %v1240_v12  ;;  %v1214_v26 = vmul.f32 %v1210_v23, %v1163_v39  ;;  %v1246_v39 = vmul.f32 0.5, %v2298_v63 }
 0x844   : > { %v1249_v22 = vadd.f32 1.0, %v1241_v16  ;;  %v1215_v30 = vmul.f32 %v1211_v24, %v1178_v37  ;;  %v1247_v37 = vmul.f32 0.5, %v2301_v2 }
 0x845   : > { %v1252_v14 = vmul.f32 %v1248_v19, %v1244_v18  ;;  %v1234_v17 = vmul.f32 %v1692_v28, %v1214_v26 }
 0x846   : > { %v1253_v25 = vmul.f32 %v1249_v22, %v1245_v20  ;;  %v1235_v38 = vmul.f32 %v1694_v32, %v1215_v30 }
 0x847   : > { %1304 = vmatmul.f32.vlgmr.msra.gmra.mxu0 %v1252_v14  ;;  %v1238_v33 = vsub.f32 1.0, %v1234_v17 }
 0x848   : > { %1327 = vmatmul.f32.vlgmr.msra.gmra.mxu1 %v1253_v25  ;;  %v1239_v35 = vsub.f32 1.0, %v1235_v38 }
 0x849   : > { %v1242_v36 = vmul.f32 %v1238_v33, %v1106_v42 }
 0x84a   : > { %v1243_v21 = vmul.f32 %v1239_v35, %v1107_v1 }
 0x84b   : > { %v1250_v34 = vadd.f32 1.0, %v1242_v36 }
 0x84c   : > { %v1251_v31 = vadd.f32 1.0, %v1243_v21 }
 0x84d   : > { %v1254_v6 = vmul.f32 %v1250_v34, %v1246_v39 }
 0x84e   : > { %v1255_v40 = vmul.f32 %v1251_v31, %v1247_v37 }
 0x84f   : > { %1307 = vmatmul.f32.gmra.mxu0 %v1254_v6 }
 0x850   : > { %1330 = vmatmul.f32.vlgmr.msra.gmra.mxu2 %v1255_v40 }
 0x8c4   : > { %v1305_v8 = vpop.f32.mrf.mxu0 }
 0x8c5   : > { %v1328_v41 = vpop.f32.mrf.mxu1 }
 0x8c6   : > { %v1329_v0 = vadd.f32 %v1328_v41, %v1305_v8 }
 0x8c8   : > { %v1334_v44 = vadd.f32 %v1329_v0, %v2244_v27 }
 0x8ca   : > { %v1340_v63 = vadd.f32 %v1652_v43, %v1334_v44 }
 0x8cc   : > { %1342 = vst [vmem:[%s487_s9] sm:$0xff] %v1340_v63  ;;  %v1308_v2 = vpop.f32.mrf.mxu0 }
 0x8d3   : > { %v1331_v47 = vpop.f32.mrf.mxu2 }
 0x8d4   : > { %v1332_v48 = vadd.f32 %v1331_v47, %v1308_v2 }
 0x8d6   : > { %v1335_v49 = vadd.f32 %v1332_v48, %v2248_v29 }
 0x8d8   : > { %v1341_v27 = vadd.f32 %v1652_v43, %v1335_v49 }
 0x8da   : > { %1343 = vst [vmem:[%s487_s9 + $0x8] sm:$0xff] %v1341_v27 }
 0x8db   : > { %1902 = shalt.err (!%p1899_p9)
}
 0x8dc   : > { %s1969_s4 = smov 128   ;;  %s1970_s9 = smov 8  }
 0x8dd   : > { %1557 = dma.vmem_to_hbm [thread:$0]  (%p2123_p13), %s1358_s12, 256, %s1360_s30, %s1345_s13, %s1969_s4, %s1969_s4, %s1970_s9  }
 0x8de PF: > { %s1374_s26 = sand.u32 1, %s1941_s17   ;;  %p2445_p10 = scmp.ge.s32.totalorder %s1953_s20, 2 }
 0x8df   : > { %s1375_s3 = scalar_lea.sflag [#allocation5], %s1374_s26 }
 0x8e0   : > { %p1580_p11 = pnand %p2445_p10, %p2128_p5 }
 0x8e2   : > { %p1581_p0 = pneg %p1580_p11 }
 0x8e4   : > { %1936 = dma.done.wait (%p1581_p0), %s1375_s3, 256  }
 0x8e5   : > { %1938 = vsyncadd (%p1581_p0), %s1375_s3, 4294967040  ;;  %p27_p2 = scmp.ge.s32.totalorder %s2103_s27, 4   ;;  %s2446_s17 = smov %s1945_s18 }
 0x8e6   : > { %s2447_s18 = smov %s1949_s19  ;;  %s2448_s19 = smov %s2115_s14 }
 0x8e7   : > { %s2449_s20 = smov %s2103_s27  ;;  %29 = sbr.rel (!%p27_p2) target bundleno = 14 (0xe), region = 129 }
 0x8ec   :  { %1381 = vsyncpa [#allocation4], 1 }
 0x8ed   :  { %1383 = vsyncpa [#allocation4 + $0x1], 1 }
 0x8ee   :  { %1384 = vsyncpa [#allocation7], 1 }
 0x8ef   :  { %1385 = vsyncpa [#allocation10], 1 }
 0x8f0   :  { %1386 = vsyncpa [#allocation13], 1 }
 0x8f1   :  { %1387 = vsyncpa [#allocation5], 1 }
 0x8f2   :  { %1389 = vsyncpa [#allocation5 + $0x1], 1 }

</bundles_post_ra>
